<compile_context>
chip_gen: v7x
topology: tpu7x:2x2x1
jax: 0.10.0
libtpu: 0.0.40
codegen_flags: <defaults>
</compile_context>

<pallas_src>
import functools
import math

import jax
import jax.numpy as jnp
from jax import lax
from jax.experimental import pallas as pl
from jax.experimental.pallas import tpu as pltpu

_LN_EPS = 1e-5          # torch.nn.LayerNorm default
_COL_TILE = 1024        # vocab column tile (multiple of 128; MXU-friendly N dim)
_ROW_TILE = 256         # row-tile cap for the vocab projection


def _round_up(x, m):
    return ((x + m - 1) // m) * m


def _compiler_params(dim_sem, block_bytes):
    """CompilerParams with an explicit scoped-VMEM limit from actual block sizes.

    2x for double buffering plus headroom; clamped to stay under v7x's 64 MiB.
    """
    limit = int(min(max(2 * block_bytes + (4 << 20), 16 << 20), 48 << 20))
    return pltpu.CompilerParams(dimension_semantics=dim_sem,
                                vmem_limit_bytes=limit)


# ----------------------------------------------------------------------------
# Kernel 1: fused decoder block (self-MHA -> add&LN -> cross-MHA -> add&LN ->
#           FFN -> add&LN).  One grid step == one batch element.
# ----------------------------------------------------------------------------
def _decoder_block_kernel(x_ref, enc_ref, wq_ref, bq_ref, wk_ref, bk_ref,
                          wv_ref, bv_ref, wo_ref, bo_ref, w1_ref, b1_ref,
                          w2_ref, b2_ref, g_ref, beta_ref, o_ref,
                          *, num_heads, d_model, eps):
    bf16 = jnp.bfloat16
    f32 = jnp.float32
    dh = d_model // num_heads
    scale = 1.0 / math.sqrt(dh)

    def layer_norm(z):
        mean = jnp.mean(z, axis=-1, keepdims=True)
        var = jnp.mean((z - mean) ** 2, axis=-1, keepdims=True)
        return (z - mean) * lax.rsqrt(var + eps) * g_ref[...] + beta_ref[...]

    def mha_add_ln(qk_src, v_src):
        # Query/key are projected from qk_src, value from v_src; the residual
        # stream is v_src (matches the module's MHA(q, k, v) + residual usage).
        qk16 = qk_src.astype(bf16)
        q = jnp.dot(qk16, wq_ref[...], preferred_element_type=f32) + bq_ref[...]
        k = jnp.dot(qk16, wk_ref[...], preferred_element_type=f32) + bk_ref[...]
        v = (jnp.dot(v_src.astype(bf16), wv_ref[...],
                     preferred_element_type=f32) + bv_ref[...])
        # TODO(synk): for S >~ 512 switch to a K/V-tiled online-softmax (flash)
        # loop instead of materializing the full (S, S) scores per head.
        heads = []
        for h in range(num_heads):                    # static unroll over heads
            sl = slice(h * dh, (h + 1) * dh)
            s = lax.dot_general(q[:, sl], k[:, sl], (((1,), (1,)), ((), ())),
                                preferred_element_type=f32) * scale
            s = s - jnp.max(s, axis=-1, keepdims=True)
            e = jnp.exp(s)
            p = e / jnp.sum(e, axis=-1, keepdims=True)   # exact normalization
            heads.append(jnp.dot(p, v[:, sl], preferred_element_type=f32))
        ctx = jnp.concatenate(heads, axis=-1)         # (S, D), stays in vregs
        out = (jnp.dot(ctx.astype(bf16), wo_ref[...],
                       preferred_element_type=f32) + bo_ref[...])
        return layer_norm(out + v_src)

    x = x_ref[0]                                      # (S, D) f32
    enc = enc_ref[0]
    ln1 = mha_add_ln(x, x)          # self-attention block: q = k = v = residual = x
    ln2 = mha_add_ln(enc, ln1)      # cross: MHA(enc, enc, ln1), residual = ln1
    # FFN block, intermediate (S, d_ff) never leaves VMEM / vregs.
    h = (jnp.dot(ln2.astype(bf16), w1_ref[...],
                 preferred_element_type=f32) + b1_ref[...])
    h = jnp.maximum(h, 0.0)
    y = (jnp.dot(h.astype(bf16), w2_ref[...],
                 preferred_element_type=f32) + b2_ref[...])
    o_ref[0] = layer_norm(y + ln2)


def fused_decoder_block(x, enc, p):
    B, S, D = x.shape
    weights = (p["wq"], p["bq"], p["wk"], p["bk"], p["wv"], p["bv"],
               p["wo"], p["bo"], p["ff_w1"], p["ff_b1"], p["ff_w2"], p["ff_b2"],
               p["ln_g"], p["ln_b"])
    act_spec = pl.BlockSpec((1, S, D), lambda b: (b, 0, 0))

    def w_spec(a):
        return pl.BlockSpec(a.shape, lambda b: (0, 0))

    block_bytes = (3 * S * D * 4
                   + sum(int(a.size) * a.dtype.itemsize for a in weights))
    kernel = functools.partial(_decoder_block_kernel, num_heads=p["num_heads"],
                               d_model=D, eps=_LN_EPS)
    return pl.pallas_call(
        kernel,
        out_shape=jax.ShapeDtypeStruct((B, S, D), jnp.float32),
        grid=(B,),
        in_specs=[act_spec, act_spec] + [w_spec(a) for a in weights],
        out_specs=pl.BlockSpec((1, S, D), lambda b: (b, 0, 0)),
        compiler_params=_compiler_params(("parallel",), block_bytes),
    )(x, enc, *weights)


# ----------------------------------------------------------------------------
# Kernels 2/3: vocab projection + softmax.
# ----------------------------------------------------------------------------
def _vocab_softmax_kernel(x_ref, w_ref, b_ref, o_ref):
    """Fast path: full (padded, lane-dense) vocab row in one block."""
    y = jnp.dot(x_ref[...].astype(jnp.bfloat16), w_ref[...],
                preferred_element_type=jnp.float32) + b_ref[...]
    y = y - jnp.max(y, axis=-1, keepdims=True)
    e = jnp.exp(y)
    o_ref[...] = e / jnp.sum(e, axis=-1, keepdims=True)


def _vocab_logits_lse_kernel(x_ref, w_ref, b_ref, y_ref, lse_ref, m_scr, l_scr):
    """Column-tiled logits + flash-style running logsumexp per row tile."""
    j = pl.program_id(1)

    @pl.when(j == 0)
    def _():
        m_scr[...] = jnp.full_like(m_scr, -jnp.inf)
        l_scr[...] = jnp.zeros_like(l_scr)

    y = jnp.dot(x_ref[...].astype(jnp.bfloat16), w_ref[...],
                preferred_element_type=jnp.float32) + b_ref[...]
    y_ref[...] = y
    m_new = jnp.maximum(m_scr[...], jnp.max(y, axis=-1, keepdims=True))
    l_scr[...] = (l_scr[...] * jnp.exp(m_scr[...] - m_new)
                  + jnp.sum(jnp.exp(y - m_new), axis=-1, keepdims=True))
    m_scr[...] = m_new

    @pl.when(j == pl.num_programs(1) - 1)
    def _():
        lse_ref[...] = m_scr[...] + jnp.log(l_scr[...])


def _softmax_apply_kernel(y_ref, lse_ref, o_ref):
    o_ref[...] = jnp.exp(y_ref[...] - lse_ref[...])


def vocab_softmax(x2d, w_bf16, b_f32):
    """softmax(x @ W + b) with bf16 weights; vocab padded to lane-dense tiles.

    Padded columns carry a -1e30 bias so they receive exactly zero probability;
    the wrapper slices the pad away.
    """
    M, D = x2d.shape
    V = w_bf16.shape[1]

    # Row tiling (8-aligned; capped, padded rows sliced away afterwards).
    tm = _ROW_TILE if M >= _ROW_TILE else _round_up(M, 8)
    Mp = _round_up(M, tm)
    if Mp != M:
        x2d = jnp.pad(x2d, ((0, Mp - M), (0, 0)))
    nr = Mp // tm

    # Column (vocab) tiling.
    if V <= _COL_TILE:
        Vp = _round_up(V, 128)
        tv, nc = Vp, 1
    else:
        Vp = _round_up(V, _COL_TILE)
        tv, nc = _COL_TILE, Vp // _COL_TILE

    w = w_bf16
    b = b_f32
    if Vp != V:
        w = jnp.pad(w, ((0, 0), (0, Vp - V)))
        b = jnp.concatenate([b, jnp.full((Vp - V,), -1e30, jnp.float32)])
    b2 = b.reshape(1, Vp)

    if nc == 1:
        # Fast path: one fused matmul + exact softmax kernel.
        block_bytes = tm * D * 4 + D * Vp * 2 + Vp * 4 + tm * Vp * 4
        out = pl.pallas_call(
            _vocab_softmax_kernel,
            out_shape=jax.ShapeDtypeStruct((Mp, Vp), jnp.float32),
            grid=(nr,),
            in_specs=[pl.BlockSpec((tm, D), lambda i: (i, 0)),
                      pl.BlockSpec((D, Vp), lambda i: (0, 0)),
                      pl.BlockSpec((1, Vp), lambda i: (0, 0))],
            out_specs=pl.BlockSpec((tm, Vp), lambda i: (i, 0)),
            compiler_params=_compiler_params(("parallel",), block_bytes),
        )(x2d, w, b2)
        return out[:M, :V]

    # Column-tiled path: weight streamed in (D, tv) bf16 blocks, per-row-tile
    # logsumexp accumulated in VMEM scratch, then a tiled normalize pass.
    block_bytes = tm * D * 4 + D * tv * 2 + tv * 4 + tm * tv * 4 + tm * 8
    logits, lse = pl.pallas_call(
        _vocab_logits_lse_kernel,
        out_shape=(jax.ShapeDtypeStruct((Mp, Vp), jnp.float32),
                   jax.ShapeDtypeStruct((Mp, 1), jnp.float32)),
        grid=(nr, nc),
        in_specs=[pl.BlockSpec((tm, D), lambda i, j: (i, 0)),
                  pl.BlockSpec((D, tv), lambda i, j: (0, j)),
                  pl.BlockSpec((1, tv), lambda i, j: (0, j))],
        out_specs=(pl.BlockSpec((tm, tv), lambda i, j: (i, j)),
                   pl.BlockSpec((tm, 1), lambda i, j: (i, 0))),
        scratch_shapes=[pltpu.VMEM((tm, 1), jnp.float32),
                        pltpu.VMEM((tm, 1), jnp.float32)],
        compiler_params=_compiler_params(("parallel", "arbitrary"), block_bytes),
    )(x2d, w, b2)

    out = pl.pallas_call(
        _softmax_apply_kernel,
        out_shape=jax.ShapeDtypeStruct((Mp, Vp), jnp.float32),
        grid=(nr, nc),
        in_specs=[pl.BlockSpec((tm, tv), lambda i, j: (i, j)),
                  pl.BlockSpec((tm, 1), lambda i, j: (i, 0))],
        out_specs=pl.BlockSpec((tm, tv), lambda i, j: (i, j)),
        compiler_params=_compiler_params(("parallel", "parallel"),
                                         2 * tm * tv * 4 + tm * 4),
    )(logits, lse)
    return out[:M, :V]


# ----------------------------------------------------------------------------
# Glue (embedding lookup + positional encoding) and full forward.
# ----------------------------------------------------------------------------
def sinusoidal_pe(S, D):
    pos = jnp.arange(S, dtype=jnp.float32)[:, None]
    i = jnp.arange(D // 2, dtype=jnp.float32)[None, :]
    angle = pos / jnp.power(10000.0, (2.0 * i) / D)
    pe = jnp.zeros((S, D), jnp.float32)
    pe = pe.at[:, 0::2].set(jnp.sin(angle))
    pe = pe.at[:, 1::2].set(jnp.cos(angle))
    return pe


def decoder_forward(output_ids, encoder_output, p):
    B, S = output_ids.shape
    D = p["d_model"]
    # Embedding lookup + positional encoding (gather glue, not the hot path).
    # TODO(synk): tutorial Encoding_embedding may scale by sqrt(d_model); plain lookup used.
    x = p["emb"][output_ids] + sinusoidal_pe(S, D)[None]          # (B, S, D) f32

    ln3 = fused_decoder_block(x, encoder_output, p)               # (B, S, D)
    probs = vocab_softmax(ln3.reshape(B * S, D), p["w_out"], p["b_out"])
    return probs.reshape(B, S, -1)


# ----------------------------------------------------------------------------
# Parameter init / one-time kernel-ready preparation.
# ----------------------------------------------------------------------------
def init_params(key, num_heads, d_model, vocab_size, output_vocab_size, d_ff):
    ks = jax.random.split(key, 8)
    s = 0.05

    def rnd(k, shape):
        return jax.random.normal(k, shape, jnp.float32) * s

    return {
        "num_heads": num_heads,
        "d_model": d_model,
        "emb": rnd(ks[0], (vocab_size, d_model)),
        "wq": rnd(ks[1], (d_model, d_model)), "bq": jnp.zeros((d_model,), jnp.float32),
        "wk": rnd(ks[2], (d_model, d_model)), "bk": jnp.zeros((d_model,), jnp.float32),
        "wv": rnd(ks[3], (d_model, d_model)), "bv": jnp.zeros((d_model,), jnp.float32),
        "wo": rnd(ks[4], (d_model, d_model)), "bo": jnp.zeros((d_model,), jnp.float32),
        "ln_g": jnp.ones((d_model,), jnp.float32),
        "ln_b": jnp.zeros((d_model,), jnp.float32),
        "ff_w1": rnd(ks[5], (d_model, d_ff)), "ff_b1": jnp.zeros((d_ff,), jnp.float32),
        "ff_w2": rnd(ks[6], (d_ff, d_model)), "ff_b2": jnp.zeros((d_model,), jnp.float32),
        "w_out": rnd(ks[7], (d_model, output_vocab_size)),
        "b_out": jnp.zeros((output_vocab_size,), jnp.float32),
    }


def prepare_params(p):
    """One-time prep: pre-cast weight matrices to bf16, (1, ·)-shape small vectors."""
    q = dict(p)
    for name in ("wq", "wk", "wv", "wo", "ff_w1", "ff_w2", "w_out"):
        q[name] = p[name].astype(jnp.bfloat16)
    for name in ("bq", "bk", "bv", "bo", "ff_b1", "ff_b2", "ln_g", "ln_b"):
        q[name] = p[name].reshape(1, -1)
    return q


# ----------------------------------------------------------------------------
if __name__ == "__main__":
    B, S = 2, 8
    num_heads, d_model = 4, 32
    vocab_size, output_vocab_size = 50, 50
    d_ff = 4 * d_model

    key = jax.random.PRNGKey(0)
    k_par, k_ids, k_enc, k_x2, k_w2 = jax.random.split(key, 5)

    params = prepare_params(init_params(k_par, num_heads, d_model, vocab_size,
                                        output_vocab_size, d_ff))
    output_ids = jax.random.randint(k_ids, (B, S), 0, vocab_size, jnp.int32)
    encoder_output = jax.random.normal(k_enc, (B, S, d_model), jnp.float32)

    out = jax.block_until_ready(decoder_forward(output_ids, encoder_output, params))
    assert out.shape == (B, S, output_vocab_size)
    assert bool(jnp.all(jnp.isfinite(out)))
    # rows of the softmax output should sum to ~1 (exact normalization in-kernel)
    assert bool(jnp.allclose(jnp.sum(out, axis=-1), 1.0, atol=1e-4))

    # Also exercise the column-tiled (online-logsumexp) vocab path with a vocab
    # large enough to require multiple 1024-wide column tiles, and check it
    # against an XLA reference with the same bf16-weight / f32-accum math.
    M2, V2 = 16, 2500
    x2 = jax.random.normal(k_x2, (M2, d_model), jnp.float32)
    w2 = (jax.random.normal(k_w2, (d_model, V2), jnp.float32) * 0.05).astype(jnp.bfloat16)
    b2 = jnp.zeros((V2,), jnp.float32)
    tiled = jax.block_until_ready(vocab_softmax(x2, w2, b2))
    ref = jax.nn.softmax(
        jnp.dot(x2.astype(jnp.bfloat16), w2,
                preferred_element_type=jnp.float32) + b2, axis=-1)
    assert tiled.shape == (M2, V2)
    assert bool(jnp.allclose(tiled, ref, atol=1e-4))
    assert bool(jnp.allclose(jnp.sum(tiled, axis=-1), 1.0, atol=1e-4))

    print("KERNEL_OK")
</pallas_src>

<mosaic_0001>
module attributes {stable_mosaic.version = 11 : i64} {
  func.func @_decoder_block_kernel(%arg0: i32, %arg1: memref<1x8x32xf32, #tpu.memory_space<vmem>>, %arg2: memref<1x8x32xf32, #tpu.memory_space<vmem>>, %arg3: memref<32x32xbf16, #tpu.memory_space<vmem>>, %arg4: memref<1x32xf32, #tpu.memory_space<vmem>>, %arg5: memref<32x32xbf16, #tpu.memory_space<vmem>>, %arg6: memref<1x32xf32, #tpu.memory_space<vmem>>, %arg7: memref<32x32xbf16, #tpu.memory_space<vmem>>, %arg8: memref<1x32xf32, #tpu.memory_space<vmem>>, %arg9: memref<32x32xbf16, #tpu.memory_space<vmem>>, %arg10: memref<1x32xf32, #tpu.memory_space<vmem>>, %arg11: memref<32x128xbf16, #tpu.memory_space<vmem>>, %arg12: memref<1x128xf32, #tpu.memory_space<vmem>>, %arg13: memref<128x32xbf16, #tpu.memory_space<vmem>>, %arg14: memref<1x32xf32, #tpu.memory_space<vmem>>, %arg15: memref<1x32xf32, #tpu.memory_space<vmem>>, %arg16: memref<1x32xf32, #tpu.memory_space<vmem>>, %arg17: memref<1x8x32xf32, #tpu.memory_space<vmem>>) attributes {dimension_semantics = [#tpu.dimension_semantics<parallel>], iteration_bounds = array<i64: 2>, scalar_prefetch = 0 : i64, scratch_operands = 0 : i64, tpu.core_type = #tpu.core_type<tc>, window_params = [{transform_indices = @transform_0, window_bounds = array<i64: 1, 8, 32>}, {transform_indices = @transform_1, window_bounds = array<i64: 1, 8, 32>}, {pipeline_mode = #tpu.pipeline_mode<synchronous>, transform_indices = @transform_2, window_bounds = array<i64: 32, 32>}, {pipeline_mode = #tpu.pipeline_mode<synchronous>, transform_indices = @transform_3, window_bounds = array<i64: 1, 32>}, {pipeline_mode = #tpu.pipeline_mode<synchronous>, transform_indices = @transform_4, window_bounds = array<i64: 32, 32>}, {pipeline_mode = #tpu.pipeline_mode<synchronous>, transform_indices = @transform_5, window_bounds = array<i64: 1, 32>}, {pipeline_mode = #tpu.pipeline_mode<synchronous>, transform_indices = @transform_6, window_bounds = array<i64: 32, 32>}, {pipeline_mode = #tpu.pipeline_mode<synchronous>, transform_indices = @transform_7, window_bounds = array<i64: 1, 32>}, {pipeline_mode = #tpu.pipeline_mode<synchronous>, transform_indices = @transform_8, window_bounds = array<i64: 32, 32>}, {pipeline_mode = #tpu.pipeline_mode<synchronous>, transform_indices = @transform_9, window_bounds = array<i64: 1, 32>}, {pipeline_mode = #tpu.pipeline_mode<synchronous>, transform_indices = @transform_10, window_bounds = array<i64: 32, 128>}, {pipeline_mode = #tpu.pipeline_mode<synchronous>, transform_indices = @transform_11, window_bounds = array<i64: 1, 128>}, {pipeline_mode = #tpu.pipeline_mode<synchronous>, transform_indices = @transform_12, window_bounds = array<i64: 128, 32>}, {pipeline_mode = #tpu.pipeline_mode<synchronous>, transform_indices = @transform_13, window_bounds = array<i64: 1, 32>}, {pipeline_mode = #tpu.pipeline_mode<synchronous>, transform_indices = @transform_14, window_bounds = array<i64: 1, 32>}, {pipeline_mode = #tpu.pipeline_mode<synchronous>, transform_indices = @transform_15, window_bounds = array<i64: 1, 32>}, {transform_indices = @transform_16, window_bounds = array<i64: 1, 8, 32>}]} {
    %c0 = arith.constant 0 : index
    %c0_0 = arith.constant 0 : index
    %c0_1 = arith.constant 0 : index
    %0 = vector.load %arg1[%c0, %c0_0, %c0_1] : memref<1x8x32xf32, #tpu.memory_space<vmem>>, vector<1x8x32xf32>
    %1 = vector.shape_cast %0 : vector<1x8x32xf32> to vector<8x32xf32>
    %c0_2 = arith.constant 0 : index
    %c0_3 = arith.constant 0 : index
    %c0_4 = arith.constant 0 : index
    %2 = vector.load %arg2[%c0_2, %c0_3, %c0_4] : memref<1x8x32xf32, #tpu.memory_space<vmem>>, vector<1x8x32xf32>
    %3 = vector.shape_cast %2 : vector<1x8x32xf32> to vector<8x32xf32>
    %4 = arith.truncf %1 : vector<8x32xf32> to vector<8x32xbf16>
    %c0_5 = arith.constant 0 : index
    %c0_6 = arith.constant 0 : index
    %5 = vector.load %arg3[%c0_5, %c0_6] : memref<32x32xbf16, #tpu.memory_space<vmem>>, vector<32x32xbf16>
    %cst = arith.constant dense<0.000000e+00> : vector<8x32xf32>
    %6 = tpu.matmul %4, %5, %cst {dimension_numbers = #tpu.dot_dimension_numbers<[1], [0], [0], [1], [0, 0, 1, 1], [], []>} : vector<8x32xbf16>, vector<32x32xbf16>, vector<8x32xf32> -> vector<8x32xf32>
    %c0_7 = arith.constant 0 : index
    %c0_8 = arith.constant 0 : index
    %7 = vector.load %arg4[%c0_7, %c0_8] : memref<1x32xf32, #tpu.memory_space<vmem>>, vector<1x32xf32>
    %8 = vector.broadcast %7 : vector<1x32xf32> to vector<8x32xf32>
    %9 = arith.addf %6, %8 : vector<8x32xf32>
    %c0_9 = arith.constant 0 : index
    %c0_10 = arith.constant 0 : index
    %10 = vector.load %arg5[%c0_9, %c0_10] : memref<32x32xbf16, #tpu.memory_space<vmem>>, vector<32x32xbf16>
    %cst_11 = arith.constant dense<0.000000e+00> : vector<8x32xf32>
    %11 = tpu.matmul %4, %10, %cst_11 {dimension_numbers = #tpu.dot_dimension_numbers<[1], [0], [0], [1], [0, 0, 1, 1], [], []>} : vector<8x32xbf16>, vector<32x32xbf16>, vector<8x32xf32> -> vector<8x32xf32>
    %c0_12 = arith.constant 0 : index
    %c0_13 = arith.constant 0 : index
    %12 = vector.load %arg6[%c0_12, %c0_13] : memref<1x32xf32, #tpu.memory_space<vmem>>, vector<1x32xf32>
    %13 = vector.broadcast %12 : vector<1x32xf32> to vector<8x32xf32>
    %14 = arith.addf %11, %13 : vector<8x32xf32>
    %15 = arith.truncf %1 : vector<8x32xf32> to vector<8x32xbf16>
    %c0_14 = arith.constant 0 : index
    %c0_15 = arith.constant 0 : index
    %16 = vector.load %arg7[%c0_14, %c0_15] : memref<32x32xbf16, #tpu.memory_space<vmem>>, vector<32x32xbf16>
    %cst_16 = arith.constant dense<0.000000e+00> : vector<8x32xf32>
    %17 = tpu.matmul %15, %16, %cst_16 {dimension_numbers = #tpu.dot_dimension_numbers<[1], [0], [0], [1], [0, 0, 1, 1], [], []>} : vector<8x32xbf16>, vector<32x32xbf16>, vector<8x32xf32> -> vector<8x32xf32>
    %c0_17 = arith.constant 0 : index
    %c0_18 = arith.constant 0 : index
    %18 = vector.load %arg8[%c0_17, %c0_18] : memref<1x32xf32, #tpu.memory_space<vmem>>, vector<1x32xf32>
    %19 = vector.broadcast %18 : vector<1x32xf32> to vector<8x32xf32>
    %20 = arith.addf %17, %19 : vector<8x32xf32>
    %21 = vector.extract_strided_slice %9 {offsets = [0, 0], sizes = [8, 8], strides = [1, 1]} : vector<8x32xf32> to vector<8x8xf32>
    %22 = vector.extract_strided_slice %14 {offsets = [0, 0], sizes = [8, 8], strides = [1, 1]} : vector<8x32xf32> to vector<8x8xf32>
    %cst_19 = arith.constant dense<0.000000e+00> : vector<8x8xf32>
    %23 = tpu.matmul %21, %22, %cst_19 {dimension_numbers = #tpu.dot_dimension_numbers<[1], [1], [0], [0], [0, 0, 1, 0], [], []>} : vector<8x8xf32>, vector<8x8xf32>, vector<8x8xf32> -> vector<8x8xf32>
    %cst_20 = arith.constant 0.353553385 : f32
    %24 = vector.broadcast %cst_20 : f32 to vector<8x8xf32>
    %25 = arith.mulf %23, %24 : vector<8x8xf32>
    %cst_21 = arith.constant dense<0xFF800000> : vector<8xf32>
    %26 = vector.multi_reduction <maximumf>, %25, %cst_21 [1] : vector<8x8xf32> to vector<8xf32>
    %27 = vector.shape_cast %26 : vector<8xf32> to vector<8x1xf32>
    %28 = vector.broadcast %27 : vector<8x1xf32> to vector<8x8xf32>
    %29 = arith.subf %25, %28 : vector<8x8xf32>
    %30 = math.exp %29 : vector<8x8xf32>
    %cst_22 = arith.constant dense<0.000000e+00> : vector<8xf32>
    %31 = vector.multi_reduction <add>, %30, %cst_22 [1] : vector<8x8xf32> to vector<8xf32>
    %32 = vector.shape_cast %31 : vector<8xf32> to vector<8x1xf32>
    %33 = vector.broadcast %32 : vector<8x1xf32> to vector<8x8xf32>
    %34 = arith.divf %30, %33 : vector<8x8xf32>
    %35 = vector.extract_strided_slice %20 {offsets = [0, 0], sizes = [8, 8], strides = [1, 1]} : vector<8x32xf32> to vector<8x8xf32>
    %cst_23 = arith.constant dense<0.000000e+00> : vector<8x8xf32>
    %36 = tpu.matmul %34, %35, %cst_23 {dimension_numbers = #tpu.dot_dimension_numbers<[1], [0], [0], [1], [0, 0, 1, 1], [], []>} : vector<8x8xf32>, vector<8x8xf32>, vector<8x8xf32> -> vector<8x8xf32>
    %37 = vector.extract_strided_slice %9 {offsets = [0, 8], sizes = [8, 8], strides = [1, 1]} : vector<8x32xf32> to vector<8x8xf32>
    %38 = vector.extract_strided_slice %14 {offsets = [0, 8], sizes = [8, 8], strides = [1, 1]} : vector<8x32xf32> to vector<8x8xf32>
    %cst_24 = arith.constant dense<0.000000e+00> : vector<8x8xf32>
    %39 = tpu.matmul %37, %38, %cst_24 {dimension_numbers = #tpu.dot_dimension_numbers<[1], [1], [0], [0], [0, 0, 1, 0], [], []>} : vector<8x8xf32>, vector<8x8xf32>, vector<8x8xf32> -> vector<8x8xf32>
    %cst_25 = arith.constant 0.353553385 : f32
    %40 = vector.broadcast %cst_25 : f32 to vector<8x8xf32>
    %41 = arith.mulf %39, %40 : vector<8x8xf32>
    %cst_26 = arith.constant dense<0xFF800000> : vector<8xf32>
    %42 = vector.multi_reduction <maximumf>, %41, %cst_26 [1] : vector<8x8xf32> to vector<8xf32>
    %43 = vector.shape_cast %42 : vector<8xf32> to vector<8x1xf32>
    %44 = vector.broadcast %43 : vector<8x1xf32> to vector<8x8xf32>
    %45 = arith.subf %41, %44 : vector<8x8xf32>
    %46 = math.exp %45 : vector<8x8xf32>
    %cst_27 = arith.constant dense<0.000000e+00> : vector<8xf32>
    %47 = vector.multi_reduction <add>, %46, %cst_27 [1] : vector<8x8xf32> to vector<8xf32>
    %48 = vector.shape_cast %47 : vector<8xf32> to vector<8x1xf32>
    %49 = vector.broadcast %48 : vector<8x1xf32> to vector<8x8xf32>
    %50 = arith.divf %46, %49 : vector<8x8xf32>
    %51 = vector.extract_strided_slice %20 {offsets = [0, 8], sizes = [8, 8], strides = [1, 1]} : vector<8x32xf32> to vector<8x8xf32>
    %cst_28 = arith.constant dense<0.000000e+00> : vector<8x8xf32>
    %52 = tpu.matmul %50, %51, %cst_28 {dimension_numbers = #tpu.dot_dimension_numbers<[1], [0], [0], [1], [0, 0, 1, 1], [], []>} : vector<8x8xf32>, vector<8x8xf32>, vector<8x8xf32> -> vector<8x8xf32>
    %53 = vector.extract_strided_slice %9 {offsets = [0, 16], sizes = [8, 8], strides = [1, 1]} : vector<8x32xf32> to vector<8x8xf32>
    %54 = vector.extract_strided_slice %14 {offsets = [0, 16], sizes = [8, 8], strides = [1, 1]} : vector<8x32xf32> to vector<8x8xf32>
    %cst_29 = arith.constant dense<0.000000e+00> : vector<8x8xf32>
    %55 = tpu.matmul %53, %54, %cst_29 {dimension_numbers = #tpu.dot_dimension_numbers<[1], [1], [0], [0], [0, 0, 1, 0], [], []>} : vector<8x8xf32>, vector<8x8xf32>, vector<8x8xf32> -> vector<8x8xf32>
    %cst_30 = arith.constant 0.353553385 : f32
    %56 = vector.broadcast %cst_30 : f32 to vector<8x8xf32>
    %57 = arith.mulf %55, %56 : vector<8x8xf32>
    %cst_31 = arith.constant dense<0xFF800000> : vector<8xf32>
    %58 = vector.multi_reduction <maximumf>, %57, %cst_31 [1] : vector<8x8xf32> to vector<8xf32>
    %59 = vector.shape_cast %58 : vector<8xf32> to vector<8x1xf32>
    %60 = vector.broadcast %59 : vector<8x1xf32> to vector<8x8xf32>
    %61 = arith.subf %57, %60 : vector<8x8xf32>
    %62 = math.exp %61 : vector<8x8xf32>
    %cst_32 = arith.constant dense<0.000000e+00> : vector<8xf32>
    %63 = vector.multi_reduction <add>, %62, %cst_32 [1] : vector<8x8xf32> to vector<8xf32>
    %64 = vector.shape_cast %63 : vector<8xf32> to vector<8x1xf32>
    %65 = vector.broadcast %64 : vector<8x1xf32> to vector<8x8xf32>
    %66 = arith.divf %62, %65 : vector<8x8xf32>
    %67 = vector.extract_strided_slice %20 {offsets = [0, 16], sizes = [8, 8], strides = [1, 1]} : vector<8x32xf32> to vector<8x8xf32>
    %cst_33 = arith.constant dense<0.000000e+00> : vector<8x8xf32>
    %68 = tpu.matmul %66, %67, %cst_33 {dimension_numbers = #tpu.dot_dimension_numbers<[1], [0], [0], [1], [0, 0, 1, 1], [], []>} : vector<8x8xf32>, vector<8x8xf32>, vector<8x8xf32> -> vector<8x8xf32>
    %69 = vector.extract_strided_slice %9 {offsets = [0, 24], sizes = [8, 8], strides = [1, 1]} : vector<8x32xf32> to vector<8x8xf32>
    %70 = vector.extract_strided_slice %14 {offsets = [0, 24], sizes = [8, 8], strides = [1, 1]} : vector<8x32xf32> to vector<8x8xf32>
    %cst_34 = arith.constant dense<0.000000e+00> : vector<8x8xf32>
    %71 = tpu.matmul %69, %70, %cst_34 {dimension_numbers = #tpu.dot_dimension_numbers<[1], [1], [0], [0], [0, 0, 1, 0], [], []>} : vector<8x8xf32>, vector<8x8xf32>, vector<8x8xf32> -> vector<8x8xf32>
    %cst_35 = arith.constant 0.353553385 : f32
    %72 = vector.broadcast %cst_35 : f32 to vector<8x8xf32>
    %73 = arith.mulf %71, %72 : vector<8x8xf32>
    %cst_36 = arith.constant dense<0xFF800000> : vector<8xf32>
    %74 = vector.multi_reduction <maximumf>, %73, %cst_36 [1] : vector<8x8xf32> to vector<8xf32>
    %75 = vector.shape_cast %74 : vector<8xf32> to vector<8x1xf32>
    %76 = vector.broadcast %75 : vector<8x1xf32> to vector<8x8xf32>
    %77 = arith.subf %73, %76 : vector<8x8xf32>
    %78 = math.exp %77 : vector<8x8xf32>
    %cst_37 = arith.constant dense<0.000000e+00> : vector<8xf32>
    %79 = vector.multi_reduction <add>, %78, %cst_37 [1] : vector<8x8xf32> to vector<8xf32>
    %80 = vector.shape_cast %79 : vector<8xf32> to vector<8x1xf32>
    %81 = vector.broadcast %80 : vector<8x1xf32> to vector<8x8xf32>
    %82 = arith.divf %78, %81 : vector<8x8xf32>
    %83 = vector.extract_strided_slice %20 {offsets = [0, 24], sizes = [8, 8], strides = [1, 1]} : vector<8x32xf32> to vector<8x8xf32>
    %cst_38 = arith.constant dense<0.000000e+00> : vector<8x8xf32>
    %84 = tpu.matmul %82, %83, %cst_38 {dimension_numbers = #tpu.dot_dimension_numbers<[1], [0], [0], [1], [0, 0, 1, 1], [], []>} : vector<8x8xf32>, vector<8x8xf32>, vector<8x8xf32> -> vector<8x8xf32>
    %85 = tpu.concatenate %36, %52, %68, %84 in 1 : vector<8x8xf32>, vector<8x8xf32>, vector<8x8xf32>, vector<8x8xf32> -> vector<8x32xf32>
    %86 = arith.truncf %85 : vector<8x32xf32> to vector<8x32xbf16>
    %c0_39 = arith.constant 0 : index
    %c0_40 = arith.constant 0 : index
    %87 = vector.load %arg9[%c0_39, %c0_40] : memref<32x32xbf16, #tpu.memory_space<vmem>>, vector<32x32xbf16>
    %cst_41 = arith.constant dense<0.000000e+00> : vector<8x32xf32>
    %88 = tpu.matmul %86, %87, %cst_41 {dimension_numbers = #tpu.dot_dimension_numbers<[1], [0], [0], [1], [0, 0, 1, 1], [], []>} : vector<8x32xbf16>, vector<32x32xbf16>, vector<8x32xf32> -> vector<8x32xf32>
    %c0_42 = arith.constant 0 : index
    %c0_43 = arith.constant 0 : index
    %89 = vector.load %arg10[%c0_42, %c0_43] : memref<1x32xf32, #tpu.memory_space<vmem>>, vector<1x32xf32>
    %90 = vector.broadcast %89 : vector<1x32xf32> to vector<8x32xf32>
    %91 = arith.addf %88, %90 : vector<8x32xf32>
    %92 = arith.addf %91, %1 : vector<8x32xf32>
    %cst_44 = arith.constant dense<0.000000e+00> : vector<8xf32>
    %93 = vector.multi_reduction <add>, %92, %cst_44 [1] : vector<8x32xf32> to vector<8xf32>
    %94 = vector.shape_cast %93 : vector<8xf32> to vector<8x1xf32>
    %cst_45 = arith.constant 3.200000e+01 : f32
    %95 = vector.broadcast %cst_45 : f32 to vector<8x1xf32>
    %96 = arith.divf %94, %95 : vector<8x1xf32>
    %97 = vector.broadcast %96 : vector<8x1xf32> to vector<8x32xf32>
    %98 = arith.subf %92, %97 : vector<8x32xf32>
    %99 = arith.mulf %98, %98 : vector<8x32xf32>
    %cst_46 = arith.constant dense<0.000000e+00> : vector<8xf32>
    %100 = vector.multi_reduction <add>, %99, %cst_46 [1] : vector<8x32xf32> to vector<8xf32>
    %101 = vector.shape_cast %100 : vector<8xf32> to vector<8x1xf32>
    %cst_47 = arith.constant 3.200000e+01 : f32
    %102 = vector.broadcast %cst_47 : f32 to vector<8x1xf32>
    %103 = arith.divf %101, %102 : vector<8x1xf32>
    %104 = vector.broadcast %96 : vector<8x1xf32> to vector<8x32xf32>
    %105 = arith.subf %92, %104 : vector<8x32xf32>
    %cst_48 = arith.constant 9.99999974E-6 : f32
    %106 = vector.broadcast %cst_48 : f32 to vector<8x1xf32>
    %107 = arith.addf %103, %106 : vector<8x1xf32>
    %108 = math.rsqrt %107 : vector<8x1xf32>
    %109 = vector.broadcast %108 : vector<8x1xf32> to vector<8x32xf32>
    %110 = arith.mulf %105, %109 : vector<8x32xf32>
    %c0_49 = arith.constant 0 : index
    %c0_50 = arith.constant 0 : index
    %111 = vector.load %arg15[%c0_49, %c0_50] : memref<1x32xf32, #tpu.memory_space<vmem>>, vector<1x32xf32>
    %112 = vector.broadcast %111 : vector<1x32xf32> to vector<8x32xf32>
    %113 = arith.mulf %110, %112 : vector<8x32xf32>
    %c0_51 = arith.constant 0 : index
    %c0_52 = arith.constant 0 : index
    %114 = vector.load %arg16[%c0_51, %c0_52] : memref<1x32xf32, #tpu.memory_space<vmem>>, vector<1x32xf32>
    %115 = vector.broadcast %114 : vector<1x32xf32> to vector<8x32xf32>
    %116 = arith.addf %113, %115 : vector<8x32xf32>
    %117 = arith.truncf %3 : vector<8x32xf32> to vector<8x32xbf16>
    %c0_53 = arith.constant 0 : index
    %c0_54 = arith.constant 0 : index
    %118 = vector.load %arg3[%c0_53, %c0_54] : memref<32x32xbf16, #tpu.memory_space<vmem>>, vector<32x32xbf16>
    %cst_55 = arith.constant dense<0.000000e+00> : vector<8x32xf32>
    %119 = tpu.matmul %117, %118, %cst_55 {dimension_numbers = #tpu.dot_dimension_numbers<[1], [0], [0], [1], [0, 0, 1, 1], [], []>} : vector<8x32xbf16>, vector<32x32xbf16>, vector<8x32xf32> -> vector<8x32xf32>
    %c0_56 = arith.constant 0 : index
    %c0_57 = arith.constant 0 : index
    %120 = vector.load %arg4[%c0_56, %c0_57] : memref<1x32xf32, #tpu.memory_space<vmem>>, vector<1x32xf32>
    %121 = vector.broadcast %120 : vector<1x32xf32> to vector<8x32xf32>
    %122 = arith.addf %119, %121 : vector<8x32xf32>
    %c0_58 = arith.constant 0 : index
    %c0_59 = arith.constant 0 : index
    %123 = vector.load %arg5[%c0_58, %c0_59] : memref<32x32xbf16, #tpu.memory_space<vmem>>, vector<32x32xbf16>
    %cst_60 = arith.constant dense<0.000000e+00> : vector<8x32xf32>
    %124 = tpu.matmul %117, %123, %cst_60 {dimension_numbers = #tpu.dot_dimension_numbers<[1], [0], [0], [1], [0, 0, 1, 1], [], []>} : vector<8x32xbf16>, vector<32x32xbf16>, vector<8x32xf32> -> vector<8x32xf32>
    %c0_61 = arith.constant 0 : index
    %c0_62 = arith.constant 0 : index
    %125 = vector.load %arg6[%c0_61, %c0_62] : memref<1x32xf32, #tpu.memory_space<vmem>>, vector<1x32xf32>
    %126 = vector.broadcast %125 : vector<1x32xf32> to vector<8x32xf32>
    %127 = arith.addf %124, %126 : vector<8x32xf32>
    %128 = arith.truncf %116 : vector<8x32xf32> to vector<8x32xbf16>
    %c0_63 = arith.constant 0 : index
    %c0_64 = arith.constant 0 : index
    %129 = vector.load %arg7[%c0_63, %c0_64] : memref<32x32xbf16, #tpu.memory_space<vmem>>, vector<32x32xbf16>
    %cst_65 = arith.constant dense<0.000000e+00> : vector<8x32xf32>
    %130 = tpu.matmul %128, %129, %cst_65 {dimension_numbers = #tpu.dot_dimension_numbers<[1], [0], [0], [1], [0, 0, 1, 1], [], []>} : vector<8x32xbf16>, vector<32x32xbf16>, vector<8x32xf32> -> vector<8x32xf32>
    %c0_66 = arith.constant 0 : index
    %c0_67 = arith.constant 0 : index
    %131 = vector.load %arg8[%c0_66, %c0_67] : memref<1x32xf32, #tpu.memory_space<vmem>>, vector<1x32xf32>
    %132 = vector.broadcast %131 : vector<1x32xf32> to vector<8x32xf32>
    %133 = arith.addf %130, %132 : vector<8x32xf32>
    %134 = vector.extract_strided_slice %122 {offsets = [0, 0], sizes = [8, 8], strides = [1, 1]} : vector<8x32xf32> to vector<8x8xf32>
    %135 = vector.extract_strided_slice %127 {offsets = [0, 0], sizes = [8, 8], strides = [1, 1]} : vector<8x32xf32> to vector<8x8xf32>
    %cst_68 = arith.constant dense<0.000000e+00> : vector<8x8xf32>
    %136 = tpu.matmul %134, %135, %cst_68 {dimension_numbers = #tpu.dot_dimension_numbers<[1], [1], [0], [0], [0, 0, 1, 0], [], []>} : vector<8x8xf32>, vector<8x8xf32>, vector<8x8xf32> -> vector<8x8xf32>
    %cst_69 = arith.constant 0.353553385 : f32
    %137 = vector.broadcast %cst_69 : f32 to vector<8x8xf32>
    %138 = arith.mulf %136, %137 : vector<8x8xf32>
    %cst_70 = arith.constant dense<0xFF800000> : vector<8xf32>
    %139 = vector.multi_reduction <maximumf>, %138, %cst_70 [1] : vector<8x8xf32> to vector<8xf32>
    %140 = vector.shape_cast %139 : vector<8xf32> to vector<8x1xf32>
    %141 = vector.broadcast %140 : vector<8x1xf32> to vector<8x8xf32>
    %142 = arith.subf %138, %141 : vector<8x8xf32>
    %143 = math.exp %142 : vector<8x8xf32>
    %cst_71 = arith.constant dense<0.000000e+00> : vector<8xf32>
    %144 = vector.multi_reduction <add>, %143, %cst_71 [1] : vector<8x8xf32> to vector<8xf32>
    %145 = vector.shape_cast %144 : vector<8xf32> to vector<8x1xf32>
    %146 = vector.broadcast %145 : vector<8x1xf32> to vector<8x8xf32>
    %147 = arith.divf %143, %146 : vector<8x8xf32>
    %148 = vector.extract_strided_slice %133 {offsets = [0, 0], sizes = [8, 8], strides = [1, 1]} : vector<8x32xf32> to vector<8x8xf32>
    %cst_72 = arith.constant dense<0.000000e+00> : vector<8x8xf32>
    %149 = tpu.matmul %147, %148, %cst_72 {dimension_numbers = #tpu.dot_dimension_numbers<[1], [0], [0], [1], [0, 0, 1, 1], [], []>} : vector<8x8xf32>, vector<8x8xf32>, vector<8x8xf32> -> vector<8x8xf32>
    %150 = vector.extract_strided_slice %122 {offsets = [0, 8], sizes = [8, 8], strides = [1, 1]} : vector<8x32xf32> to vector<8x8xf32>
    %151 = vector.extract_strided_slice %127 {offsets = [0, 8], sizes = [8, 8], strides = [1, 1]} : vector<8x32xf32> to vector<8x8xf32>
    %cst_73 = arith.constant dense<0.000000e+00> : vector<8x8xf32>
    %152 = tpu.matmul %150, %151, %cst_73 {dimension_numbers = #tpu.dot_dimension_numbers<[1], [1], [0], [0], [0, 0, 1, 0], [], []>} : vector<8x8xf32>, vector<8x8xf32>, vector<8x8xf32> -> vector<8x8xf32>
    %cst_74 = arith.constant 0.353553385 : f32
    %153 = vector.broadcast %cst_74 : f32 to vector<8x8xf32>
    %154 = arith.mulf %152, %153 : vector<8x8xf32>
    %cst_75 = arith.constant dense<0xFF800000> : vector<8xf32>
    %155 = vector.multi_reduction <maximumf>, %154, %cst_75 [1] : vector<8x8xf32> to vector<8xf32>
    %156 = vector.shape_cast %155 : vector<8xf32> to vector<8x1xf32>
    %157 = vector.broadcast %156 : vector<8x1xf32> to vector<8x8xf32>
    %158 = arith.subf %154, %157 : vector<8x8xf32>
    %159 = math.exp %158 : vector<8x8xf32>
    %cst_76 = arith.constant dense<0.000000e+00> : vector<8xf32>
    %160 = vector.multi_reduction <add>, %159, %cst_76 [1] : vector<8x8xf32> to vector<8xf32>
    %161 = vector.shape_cast %160 : vector<8xf32> to vector<8x1xf32>
    %162 = vector.broadcast %161 : vector<8x1xf32> to vector<8x8xf32>
    %163 = arith.divf %159, %162 : vector<8x8xf32>
    %164 = vector.extract_strided_slice %133 {offsets = [0, 8], sizes = [8, 8], strides = [1, 1]} : vector<8x32xf32> to vector<8x8xf32>
    %cst_77 = arith.constant dense<0.000000e+00> : vector<8x8xf32>
    %165 = tpu.matmul %163, %164, %cst_77 {dimension_numbers = #tpu.dot_dimension_numbers<[1], [0], [0], [1], [0, 0, 1, 1], [], []>} : vector<8x8xf32>, vector<8x8xf32>, vector<8x8xf32> -> vector<8x8xf32>
    %166 = vector.extract_strided_slice %122 {offsets = [0, 16], sizes = [8, 8], strides = [1, 1]} : vector<8x32xf32> to vector<8x8xf32>
    %167 = vector.extract_strided_slice %127 {offsets = [0, 16], sizes = [8, 8], strides = [1, 1]} : vector<8x32xf32> to vector<8x8xf32>
    %cst_78 = arith.constant dense<0.000000e+00> : vector<8x8xf32>
    %168 = tpu.matmul %166, %167, %cst_78 {dimension_numbers = #tpu.dot_dimension_numbers<[1], [1], [0], [0], [0, 0, 1, 0], [], []>} : vector<8x8xf32>, vector<8x8xf32>, vector<8x8xf32> -> vector<8x8xf32>
    %cst_79 = arith.constant 0.353553385 : f32
    %169 = vector.broadcast %cst_79 : f32 to vector<8x8xf32>
    %170 = arith.mulf %168, %169 : vector<8x8xf32>
    %cst_80 = arith.constant dense<0xFF800000> : vector<8xf32>
    %171 = vector.multi_reduction <maximumf>, %170, %cst_80 [1] : vector<8x8xf32> to vector<8xf32>
    %172 = vector.shape_cast %171 : vector<8xf32> to vector<8x1xf32>
    %173 = vector.broadcast %172 : vector<8x1xf32> to vector<8x8xf32>
    %174 = arith.subf %170, %173 : vector<8x8xf32>
    %175 = math.exp %174 : vector<8x8xf32>
    %cst_81 = arith.constant dense<0.000000e+00> : vector<8xf32>
    %176 = vector.multi_reduction <add>, %175, %cst_81 [1] : vector<8x8xf32> to vector<8xf32>
    %177 = vector.shape_cast %176 : vector<8xf32> to vector<8x1xf32>
    %178 = vector.broadcast %177 : vector<8x1xf32> to vector<8x8xf32>
    %179 = arith.divf %175, %178 : vector<8x8xf32>
    %180 = vector.extract_strided_slice %133 {offsets = [0, 16], sizes = [8, 8], strides = [1, 1]} : vector<8x32xf32> to vector<8x8xf32>
    %cst_82 = arith.constant dense<0.000000e+00> : vector<8x8xf32>
    %181 = tpu.matmul %179, %180, %cst_82 {dimension_numbers = #tpu.dot_dimension_numbers<[1], [0], [0], [1], [0, 0, 1, 1], [], []>} : vector<8x8xf32>, vector<8x8xf32>, vector<8x8xf32> -> vector<8x8xf32>
    %182 = vector.extract_strided_slice %122 {offsets = [0, 24], sizes = [8, 8], strides = [1, 1]} : vector<8x32xf32> to vector<8x8xf32>
    %183 = vector.extract_strided_slice %127 {offsets = [0, 24], sizes = [8, 8], strides = [1, 1]} : vector<8x32xf32> to vector<8x8xf32>
    %cst_83 = arith.constant dense<0.000000e+00> : vector<8x8xf32>
    %184 = tpu.matmul %182, %183, %cst_83 {dimension_numbers = #tpu.dot_dimension_numbers<[1], [1], [0], [0], [0, 0, 1, 0], [], []>} : vector<8x8xf32>, vector<8x8xf32>, vector<8x8xf32> -> vector<8x8xf32>
    %cst_84 = arith.constant 0.353553385 : f32
    %185 = vector.broadcast %cst_84 : f32 to vector<8x8xf32>
    %186 = arith.mulf %184, %185 : vector<8x8xf32>
    %cst_85 = arith.constant dense<0xFF800000> : vector<8xf32>
    %187 = vector.multi_reduction <maximumf>, %186, %cst_85 [1] : vector<8x8xf32> to vector<8xf32>
    %188 = vector.shape_cast %187 : vector<8xf32> to vector<8x1xf32>
    %189 = vector.broadcast %188 : vector<8x1xf32> to vector<8x8xf32>
    %190 = arith.subf %186, %189 : vector<8x8xf32>
    %191 = math.exp %190 : vector<8x8xf32>
    %cst_86 = arith.constant dense<0.000000e+00> : vector<8xf32>
    %192 = vector.multi_reduction <add>, %191, %cst_86 [1] : vector<8x8xf32> to vector<8xf32>
    %193 = vector.shape_cast %192 : vector<8xf32> to vector<8x1xf32>
    %194 = vector.broadcast %193 : vector<8x1xf32> to vector<8x8xf32>
    %195 = arith.divf %191, %194 : vector<8x8xf32>
    %196 = vector.extract_strided_slice %133 {offsets = [0, 24], sizes = [8, 8], strides = [1, 1]} : vector<8x32xf32> to vector<8x8xf32>
    %cst_87 = arith.constant dense<0.000000e+00> : vector<8x8xf32>
    %197 = tpu.matmul %195, %196, %cst_87 {dimension_numbers = #tpu.dot_dimension_numbers<[1], [0], [0], [1], [0, 0, 1, 1], [], []>} : vector<8x8xf32>, vector<8x8xf32>, vector<8x8xf32> -> vector<8x8xf32>
    %198 = tpu.concatenate %149, %165, %181, %197 in 1 : vector<8x8xf32>, vector<8x8xf32>, vector<8x8xf32>, vector<8x8xf32> -> vector<8x32xf32>
    %199 = arith.truncf %198 : vector<8x32xf32> to vector<8x32xbf16>
    %c0_88 = arith.constant 0 : index
    %c0_89 = arith.constant 0 : index
    %200 = vector.load %arg9[%c0_88, %c0_89] : memref<32x32xbf16, #tpu.memory_space<vmem>>, vector<32x32xbf16>
    %cst_90 = arith.constant dense<0.000000e+00> : vector<8x32xf32>
    %201 = tpu.matmul %199, %200, %cst_90 {dimension_numbers = #tpu.dot_dimension_numbers<[1], [0], [0], [1], [0, 0, 1, 1], [], []>} : vector<8x32xbf16>, vector<32x32xbf16>, vector<8x32xf32> -> vector<8x32xf32>
    %c0_91 = arith.constant 0 : index
    %c0_92 = arith.constant 0 : index
    %202 = vector.load %arg10[%c0_91, %c0_92] : memref<1x32xf32, #tpu.memory_space<vmem>>, vector<1x32xf32>
    %203 = vector.broadcast %202 : vector<1x32xf32> to vector<8x32xf32>
    %204 = arith.addf %201, %203 : vector<8x32xf32>
    %205 = arith.addf %204, %116 : vector<8x32xf32>
    %cst_93 = arith.constant dense<0.000000e+00> : vector<8xf32>
    %206 = vector.multi_reduction <add>, %205, %cst_93 [1] : vector<8x32xf32> to vector<8xf32>
    %207 = vector.shape_cast %206 : vector<8xf32> to vector<8x1xf32>
    %cst_94 = arith.constant 3.200000e+01 : f32
    %208 = vector.broadcast %cst_94 : f32 to vector<8x1xf32>
    %209 = arith.divf %207, %208 : vector<8x1xf32>
    %210 = vector.broadcast %209 : vector<8x1xf32> to vector<8x32xf32>
    %211 = arith.subf %205, %210 : vector<8x32xf32>
    %212 = arith.mulf %211, %211 : vector<8x32xf32>
    %cst_95 = arith.constant dense<0.000000e+00> : vector<8xf32>
    %213 = vector.multi_reduction <add>, %212, %cst_95 [1] : vector<8x32xf32> to vector<8xf32>
    %214 = vector.shape_cast %213 : vector<8xf32> to vector<8x1xf32>
    %cst_96 = arith.constant 3.200000e+01 : f32
    %215 = vector.broadcast %cst_96 : f32 to vector<8x1xf32>
    %216 = arith.divf %214, %215 : vector<8x1xf32>
    %217 = vector.broadcast %209 : vector<8x1xf32> to vector<8x32xf32>
    %218 = arith.subf %205, %217 : vector<8x32xf32>
    %cst_97 = arith.constant 9.99999974E-6 : f32
    %219 = vector.broadcast %cst_97 : f32 to vector<8x1xf32>
    %220 = arith.addf %216, %219 : vector<8x1xf32>
    %221 = math.rsqrt %220 : vector<8x1xf32>
    %222 = vector.broadcast %221 : vector<8x1xf32> to vector<8x32xf32>
    %223 = arith.mulf %218, %222 : vector<8x32xf32>
    %c0_98 = arith.constant 0 : index
    %c0_99 = arith.constant 0 : index
    %224 = vector.load %arg15[%c0_98, %c0_99] : memref<1x32xf32, #tpu.memory_space<vmem>>, vector<1x32xf32>
    %225 = vector.broadcast %224 : vector<1x32xf32> to vector<8x32xf32>
    %226 = arith.mulf %223, %225 : vector<8x32xf32>
    %c0_100 = arith.constant 0 : index
    %c0_101 = arith.constant 0 : index
    %227 = vector.load %arg16[%c0_100, %c0_101] : memref<1x32xf32, #tpu.memory_space<vmem>>, vector<1x32xf32>
    %228 = vector.broadcast %227 : vector<1x32xf32> to vector<8x32xf32>
    %229 = arith.addf %226, %228 : vector<8x32xf32>
    %230 = arith.truncf %229 : vector<8x32xf32> to vector<8x32xbf16>
    %c0_102 = arith.constant 0 : index
    %c0_103 = arith.constant 0 : index
    %231 = vector.load %arg11[%c0_102, %c0_103] : memref<32x128xbf16, #tpu.memory_space<vmem>>, vector<32x128xbf16>
    %cst_104 = arith.constant dense<0.000000e+00> : vector<8x128xf32>
    %232 = tpu.matmul %230, %231, %cst_104 {dimension_numbers = #tpu.dot_dimension_numbers<[1], [0], [0], [1], [0, 0, 1, 1], [], []>} : vector<8x32xbf16>, vector<32x128xbf16>, vector<8x128xf32> -> vector<8x128xf32>
    %c0_105 = arith.constant 0 : index
    %c0_106 = arith.constant 0 : index
    %233 = vector.load %arg12[%c0_105, %c0_106] : memref<1x128xf32, #tpu.memory_space<vmem>>, vector<1x128xf32>
    %234 = vector.broadcast %233 : vector<1x128xf32> to vector<8x128xf32>
    %235 = arith.addf %232, %234 : vector<8x128xf32>
    %cst_107 = arith.constant 0.000000e+00 : f32
    %236 = vector.broadcast %cst_107 : f32 to vector<8x128xf32>
    %237 = arith.maximumf %235, %236 : vector<8x128xf32>
    %238 = arith.truncf %237 : vector<8x128xf32> to vector<8x128xbf16>
    %c0_108 = arith.constant 0 : index
    %c0_109 = arith.constant 0 : index
    %239 = vector.load %arg13[%c0_108, %c0_109] : memref<128x32xbf16, #tpu.memory_space<vmem>>, vector<128x32xbf16>
    %cst_110 = arith.constant dense<0.000000e+00> : vector<8x32xf32>
    %240 = tpu.matmul %238, %239, %cst_110 {dimension_numbers = #tpu.dot_dimension_numbers<[1], [0], [0], [1], [0, 0, 1, 1], [], []>} : vector<8x128xbf16>, vector<128x32xbf16>, vector<8x32xf32> -> vector<8x32xf32>
    %c0_111 = arith.constant 0 : index
    %c0_112 = arith.constant 0 : index
    %241 = vector.load %arg14[%c0_111, %c0_112] : memref<1x32xf32, #tpu.memory_space<vmem>>, vector<1x32xf32>
    %242 = vector.broadcast %241 : vector<1x32xf32> to vector<8x32xf32>
    %243 = arith.addf %240, %242 : vector<8x32xf32>
    %244 = arith.addf %243, %229 : vector<8x32xf32>
    %cst_113 = arith.constant dense<0.000000e+00> : vector<8xf32>
    %245 = vector.multi_reduction <add>, %244, %cst_113 [1] : vector<8x32xf32> to vector<8xf32>
    %246 = vector.shape_cast %245 : vector<8xf32> to vector<8x1xf32>
    %cst_114 = arith.constant 3.200000e+01 : f32
    %247 = vector.broadcast %cst_114 : f32 to vector<8x1xf32>
    %248 = arith.divf %246, %247 : vector<8x1xf32>
    %249 = vector.broadcast %248 : vector<8x1xf32> to vector<8x32xf32>
    %250 = arith.subf %244, %249 : vector<8x32xf32>
    %251 = arith.mulf %250, %250 : vector<8x32xf32>
    %cst_115 = arith.constant dense<0.000000e+00> : vector<8xf32>
    %252 = vector.multi_reduction <add>, %251, %cst_115 [1] : vector<8x32xf32> to vector<8xf32>
    %253 = vector.shape_cast %252 : vector<8xf32> to vector<8x1xf32>
    %cst_116 = arith.constant 3.200000e+01 : f32
    %254 = vector.broadcast %cst_116 : f32 to vector<8x1xf32>
    %255 = arith.divf %253, %254 : vector<8x1xf32>
    %256 = vector.broadcast %248 : vector<8x1xf32> to vector<8x32xf32>
    %257 = arith.subf %244, %256 : vector<8x32xf32>
    %cst_117 = arith.constant 9.99999974E-6 : f32
    %258 = vector.broadcast %cst_117 : f32 to vector<8x1xf32>
    %259 = arith.addf %255, %258 : vector<8x1xf32>
    %260 = math.rsqrt %259 : vector<8x1xf32>
    %261 = vector.broadcast %260 : vector<8x1xf32> to vector<8x32xf32>
    %262 = arith.mulf %257, %261 : vector<8x32xf32>
    %c0_118 = arith.constant 0 : index
    %c0_119 = arith.constant 0 : index
    %263 = vector.load %arg15[%c0_118, %c0_119] : memref<1x32xf32, #tpu.memory_space<vmem>>, vector<1x32xf32>
    %264 = vector.broadcast %263 : vector<1x32xf32> to vector<8x32xf32>
    %265 = arith.mulf %262, %264 : vector<8x32xf32>
    %c0_120 = arith.constant 0 : index
    %c0_121 = arith.constant 0 : index
    %266 = vector.load %arg16[%c0_120, %c0_121] : memref<1x32xf32, #tpu.memory_space<vmem>>, vector<1x32xf32>
    %267 = vector.broadcast %266 : vector<1x32xf32> to vector<8x32xf32>
    %268 = arith.addf %265, %267 : vector<8x32xf32>
    %c0_122 = arith.constant 0 : index
    %c0_123 = arith.constant 0 : index
    %c0_124 = arith.constant 0 : index
    %269 = vector.load %arg17[%c0_122, %c0_123, %c0_124] : memref<1x8x32xf32, #tpu.memory_space<vmem>>, vector<1x8x32xf32>
    %270 = vector.shape_cast %269 : vector<1x8x32xf32> to vector<8x32xf32>
    %271 = vector.shape_cast %268 : vector<8x32xf32> to vector<1x8x32xf32>
    tpu.vector_store %arg17[%c0_122, %c0_123, %c0_124], %271 {strides = array<i32>} : memref<1x8x32xf32, #tpu.memory_space<vmem>>, vector<1x8x32xf32>,
    return
  }
  func.func @transform_0(%arg0: i32) -> (i32, i32, i32) {
    %c0_i32 = arith.constant 0 : i32
    %c0_i32_0 = arith.constant 0 : i32
    %c0_i32_1 = arith.constant 0 : i32
    return %arg0, %c0_i32, %c0_i32_0 : i32, i32, i32
  }
  func.func @transform_1(%arg0: i32) -> (i32, i32, i32) {
    %c0_i32 = arith.constant 0 : i32
    %c0_i32_0 = arith.constant 0 : i32
    %c0_i32_1 = arith.constant 0 : i32
    return %arg0, %c0_i32, %c0_i32_0 : i32, i32, i32
  }
  func.func @transform_2(%arg0: i32) -> (i32, i32) {
    %c0_i32 = arith.constant 0 : i32
    %c0_i32_0 = arith.constant 0 : i32
    %c0_i32_1 = arith.constant 0 : i32
    return %c0_i32, %c0_i32_0 : i32, i32
  }
  func.func @transform_3(%arg0: i32) -> (i32, i32) {
    %c0_i32 = arith.constant 0 : i32
    %c0_i32_0 = arith.constant 0 : i32
    %c0_i32_1 = arith.constant 0 : i32
    return %c0_i32, %c0_i32_0 : i32, i32
  }
  func.func @transform_4(%arg0: i32) -> (i32, i32) {
    %c0_i32 = arith.constant 0 : i32
    %c0_i32_0 = arith.constant 0 : i32
    %c0_i32_1 = arith.constant 0 : i32
    return %c0_i32, %c0_i32_0 : i32, i32
  }
  func.func @transform_5(%arg0: i32) -> (i32, i32) {
    %c0_i32 = arith.constant 0 : i32
    %c0_i32_0 = arith.constant 0 : i32
    %c0_i32_1 = arith.constant 0 : i32
    return %c0_i32, %c0_i32_0 : i32, i32
  }
  func.func @transform_6(%arg0: i32) -> (i32, i32) {
    %c0_i32 = arith.constant 0 : i32
    %c0_i32_0 = arith.constant 0 : i32
    %c0_i32_1 = arith.constant 0 : i32
    return %c0_i32, %c0_i32_0 : i32, i32
  }
  func.func @transform_7(%arg0: i32) -> (i32, i32) {
    %c0_i32 = arith.constant 0 : i32
    %c0_i32_0 = arith.constant 0 : i32
    %c0_i32_1 = arith.constant 0 : i32
    return %c0_i32, %c0_i32_0 : i32, i32
  }
  func.func @transform_8(%arg0: i32) -> (i32, i32) {
    %c0_i32 = arith.constant 0 : i32
    %c0_i32_0 = arith.constant 0 : i32
    %c0_i32_1 = arith.constant 0 : i32
    return %c0_i32, %c0_i32_0 : i32, i32
  }
  func.func @transform_9(%arg0: i32) -> (i32, i32) {
    %c0_i32 = arith.constant 0 : i32
    %c0_i32_0 = arith.constant 0 : i32
    %c0_i32_1 = arith.constant 0 : i32
    return %c0_i32, %c0_i32_0 : i32, i32
  }
  func.func @transform_10(%arg0: i32) -> (i32, i32) {
    %c0_i32 = arith.constant 0 : i32
    %c0_i32_0 = arith.constant 0 : i32
    %c0_i32_1 = arith.constant 0 : i32
    return %c0_i32, %c0_i32_0 : i32, i32
  }
  func.func @transform_11(%arg0: i32) -> (i32, i32) {
    %c0_i32 = arith.constant 0 : i32
    %c0_i32_0 = arith.constant 0 : i32
    %c0_i32_1 = arith.constant 0 : i32
    return %c0_i32, %c0_i32_0 : i32, i32
  }
  func.func @transform_12(%arg0: i32) -> (i32, i32) {
    %c0_i32 = arith.constant 0 : i32
    %c0_i32_0 = arith.constant 0 : i32
    %c0_i32_1 = arith.constant 0 : i32
    return %c0_i32, %c0_i32_0 : i32, i32
  }
  func.func @transform_13(%arg0: i32) -> (i32, i32) {
    %c0_i32 = arith.constant 0 : i32
    %c0_i32_0 = arith.constant 0 : i32
    %c0_i32_1 = arith.constant 0 : i32
    return %c0_i32, %c0_i32_0 : i32, i32
  }
  func.func @transform_14(%arg0: i32) -> (i32, i32) {
    %c0_i32 = arith.constant 0 : i32
    %c0_i32_0 = arith.constant 0 : i32
    %c0_i32_1 = arith.constant 0 : i32
    return %c0_i32, %c0_i32_0 : i32, i32
  }
  func.func @transform_15(%arg0: i32) -> (i32, i32) {
    %c0_i32 = arith.constant 0 : i32
    %c0_i32_0 = arith.constant 0 : i32
    %c0_i32_1 = arith.constant 0 : i32
    return %c0_i32, %c0_i32_0 : i32, i32
  }
  func.func @transform_16(%arg0: i32) -> (i32, i32, i32) {
    %c0_i32 = arith.constant 0 : i32
    %c0_i32_0 = arith.constant 0 : i32
    %c0_i32_1 = arith.constant 0 : i32
    return %arg0, %c0_i32, %c0_i32_0 : i32, i32, i32
  }
}

</mosaic_0001>

<bundles_post_ra>
// kernel: tpu_custom_call.1
= control target key start
LH: loop header
LB: loop body
LE: loop exit
PB: predicated region body
PF: predicated region fallthrough
CT: control target
= control target key end

     0   :  { %s3964_s0 = inlined_call_operand.vmem [shape: f32[2,8,32], index: 0, kind: input, shape index: {}]   ;;  %s3965_s1 = inlined_call_operand.vmem [shape: f32[2,8,32], index: 1, kind: input, shape index: {}]   ;;  %s3966_s2 = inlined_call_operand.vmem [shape: bf16[32,32], index: 2, kind: input, shape index: {}]   ;;  %s3967_s3 = inlined_call_operand.vmem [shape: f32[1,32], index: 3, kind: input, shape index: {}]   ;;  %s3968_s4 = inlined_call_operand.vmem [shape: bf16[32,32], index: 4, kind: input, shape index: {}]   ;;  %s3969_s5 = inlined_call_operand.vmem [shape: f32[1,32], index: 5, kind: input, shape index: {}]   ;;  %s3970_s6 = inlined_call_operand.vmem [shape: bf16[32,32], index: 6, kind: input, shape index: {}]   ;;  %s3971_s7 = inlined_call_operand.hbm [shape: f32[1,32], index: 7, kind: input, shape index: {}]   ;;  %s3972_s8 = inlined_call_operand.hbm [shape: bf16[32,32], index: 8, kind: input, shape index: {}]   ;;  %s3973_s9 = inlined_call_operand.hbm [shape: f32[1,32], index: 9, kind: input, shape index: {}]   ;;  %s3974_s10 = inlined_call_operand.vmem [shape: bf16[32,128], index: 10, kind: input, shape index: {}]   ;;  %s3975_s11 = inlined_call_operand.vmem [shape: f32[1,128], index: 11, kind: input, shape index: {}]   ;;  %s3976_s12 = inlined_call_operand.vmem [shape: bf16[128,32], index: 12, kind: input, shape index: {}]   ;;  %s3977_s13 = inlined_call_operand.vmem [shape: f32[1,32], index: 13, kind: input, shape index: {}]   ;;  %s3978_s14 = inlined_call_operand.vmem [shape: f32[1,32], index: 14, kind: input, shape index: {}]   ;;  %s3979_s15 = inlined_call_operand.vmem [shape: f32[1,32], index: 15, kind: input, shape index: {}]   ;;  %s3980_s16 = inlined_call_operand.hbm [shape: f32[2,8,32], index: 16, kind: output, shape index: {}]  }
   0x1   :  { %3994 = sst [smem:[#allocation20_spill]] %s3964_s0 }
   0x2   :  { %3995 = sst [smem:[#allocation21_spill]] %s3975_s11 }
   0x3   :  { %3996 = sst [smem:[#allocation22_spill]] %s3977_s13 }
   0x4   :  { %3997 = sst [smem:[#allocation23_spill]] %s3980_s16 }
   0x5   :  { %21 = vsyncpa [#allocation3], 0 }
   0x6   :  { %22 = vsyncpa [#allocation6], 0 }
   0x7   :  { %23 = vsyncpa [#allocation4], 0 }
   0x8   :  { %25 = vsyncpa [#allocation4 + $0x1], 0  ;;  %s3430_s21 = smov 0   ;;  %s3432_s22 = smov 0  }
   0x9   :  { %s3434_s23 = smov 0   ;;  %s3436_s24 = smov 0  }
   0xa LB: > { %3998 = sst [smem:[#allocation12_spill]] %s3317_s21  ;;  %s3451_s25 = sadd.s32 4294967295, %s3329_s24   ;;  %s3329_s24 = sphi %s3436_s24, %s4027_s24   ;;  %s3325_s23 = sphi %s3434_s23, %s4030_s23   ;;  %s3321_s22 = sphi %s3432_s22, %s4029_s22   ;;  %s3317_s21 = sphi %s3430_s21, %s4028_s21  }
   0xb   : > { %3999 = sst [smem:[#allocation13_spill]] %s3321_s22  ;;  %s2723_s26 = sadd.s32 4294967294, %s3329_s24  }
   0xc   : > { %4000 = sst [smem:[#allocation14_spill]] %s3325_s23  ;;  %s3455_s27 = sadd.s32 1, %s3329_s24  }
   0xd   : > { %4001 = sst [smem:[#allocation15_spill]] %s3329_s24  ;;  %s384_s28 = sadd.s32 1, %s3325_s23 }
   0xe   : > { %4002 = sst [smem:[#allocation16_spill]] %s3455_s27  ;;  %s381_s29 = ssub.s32 %s3329_s24, %s3455_s27 }
   0xf   : > { %p394_p0 = scmp.ne.s32.totalorder %s3325_s23, %s3321_s22  ;;  %p382_p1 = scmp.eq.s32.totalorder %s381_s29, 0 }
  0x10   : > { %p395_p2 = scmp.eq.s32.totalorder %s3451_s25, 1  ;;  %p400_p3 = scmp.ne.s32.totalorder %s3321_s22, %s3317_s21 }
  0x11   : > { %p401_p4 = scmp.eq.s32.totalorder %s2723_s26, 1  ;;  %p2724_p7 = scmp.ge.s32.totalorder %s3329_s24, 1 }
  0x12   : > { %s3466_s30 = scalar_select %p382_p1, %s3325_s23, %s384_s28  }
  0x13   : > { %p3468_p5 = por %p395_p2, %p394_p0  ;;  %p3472_p6 = por %p401_p4, %p400_p3 }
  0x14   : > { %4003 = sst [smem:[#allocation17_spill]] %s3466_s30  ;;  %p408_p8 = scmp.lt.s32.totalorder %s3329_s24, 3 }
  0x15   : > { %s4004_s0 = scalar_select %p3468_p5, 1, 0 }
  0x16   : > { %s4006_s17 = scalar_select %p3472_p6, 1, 0 }
  0x17   : > { %4005 = sst [smem:[#allocation18_spill]] %s4004_s0  ;;  %p3988_p9 = scmp.eq.s32.totalorder %s3451_s25, 0 }
  0x18   : > { %4007 = sst [smem:[#allocation19_spill]] %s4006_s17  ;;  %p3479_p10 = pnand %p2724_p7, %p408_p8 }
  0x19   : > { %s3331_s19 = smov [#allocation5]   ;;  %s3332_s28 = smov [#allocation2]  }
  0x1a   : > { %s4008_s18 = scalar_select %p3479_p10, 1, 0 }
  0x1b   : > { %s446_s20 = sshll.u32 %s3331_s19, 4  ;;  %p3053_p11 = pneg %p3479_p10  ;;  %s3485_s20 = int_to_ptr.vmem [resolvable:$true] %s446_s20 }
  0x1c   : > { %s436_s29 = sshll.u32 %s3332_s28, 4  ;;  %s3333_s30 = smov [#allocation7]   ;;  %s3493_s29 = int_to_ptr.vmem [resolvable:$true] %s436_s29 }
  0x1d   : > { %p3489_p12 = pnand %p3988_p9, %p3053_p11  ;;  %s3495_s23 = sshll.u32 %s3333_s30, 4  ;;  %s461_s23 = int_to_ptr.vmem [resolvable:$true] %s3495_s23 }
  0x1e   : > { %s3175_s19 = scalar_lea.hbm %s3972_s8, 256 }
  0x1f   : > { %p3176_p13 = scmp.ne.s32.totalorder %s3972_s8, %s3175_s19  ;;  %p3505_p0 = pneg %p3489_p12 }
  0x20   : > { %p3182_p3 = scmp.lt.u32.totalorder %s3175_s19, %s3972_s8 }
  0x21   : > { %p3178_p1 = pnand %p3505_p0, %p3176_p13 }
  0x23   : > { %p3179_p2 = pneg %p3178_p1 }
  0x25   : > { %p3184_p4 = pnand %p3182_p3, %p3179_p2 }
  0x27   : > { %3187 = shalt.err (!%p3184_p4)
}
  0x28   : > { %s3188_s21 = scalar_lea.vmem %s3485_s20, 256  ;;  %p3196_p9 = scmp.lt.s32.totalorder %s3485_s20, %s3485_s20 }
  0x29   : > { %p3189_p7 = scmp.ne.s32.totalorder %s3485_s20, %s3188_s21  ;;  %p3197_p6 = scmp.lt.s32.totalorder %s3188_s21, %s3188_s21 }
  0x2b   : > { %p3191_p8 = pnand %p3189_p7, %p3505_p0  ;;  %p3198_p13 = por %p3197_p6, %p3196_p9 }
  0x2d   : > { %p3192_p11 = pneg %p3191_p8 }
  0x2f   : > { %p3199_p1 = pnand %p3198_p13, %p3192_p11 }
  0x31   : > { %3202 = shalt.err (!%p3199_p1)
}
  0x32   : > { %s3334_s24 = smov 64   ;;  %s3335_s27 = smov 4  }
  0x33   : > { %3059 = dma.hbm_to_vmem [thread:$0]  (!%p3489_p12), %s3972_s8, 256, %s3485_s20, [#allocation6], %s3334_s24, %s3334_s24, %s3335_s27  }
  0x34   : > { %s3203_s0 = scalar_lea.hbm %s3971_s7, 16 }
  0x35   : > { %p3204_p6 = scmp.ne.s32.totalorder %s3971_s7, %s3203_s0  ;;  %p3210_p3 = scmp.lt.u32.totalorder %s3203_s0, %s3971_s7 }
  0x37   : > { %p3206_p9 = pnand %p3204_p6, %p3505_p0 }
  0x39   : > { %p3207_p2 = pneg %p3206_p9 }
  0x3b   : > { %p3212_p4 = pnand %p3210_p3, %p3207_p2 }
  0x3d   : > { %3215 = shalt.err (!%p3212_p4)
}
  0x3e   : > { %s3216_s20 = scalar_lea.vmem %s3493_s29, 16  ;;  %s3223_s13 = scalar_lea.vmem %s3493_s29, 32 }
  0x3f   : > { %p3217_p7 = scmp.ne.s32.totalorder %s3493_s29, %s3216_s20  ;;  %p3224_p13 = scmp.lt.s32.totalorder %s3493_s29, %s3493_s29 }
  0x40   : > { %p3225_p1 = scmp.lt.s32.totalorder %s3223_s13, %s3216_s20 }
  0x41   : > { %p3219_p8 = pnand %p3217_p7, %p3505_p0 }
  0x42   : > { %p3226_p6 = por %p3225_p1, %p3224_p13 }
  0x43   : > { %p3220_p11 = pneg %p3219_p8 }
  0x45   : > { %p3227_p9 = pnand %p3226_p6, %p3220_p11 }
  0x47   : > { %3230 = shalt.err (!%p3227_p9)
}
  0x48   : > { %3056 = dma.hbm_to_vmem [thread:$0]  (!%p3489_p12), %s3971_s7, 16, %s3493_s29, [#allocation3]  }
  0x49   : > { %s3231_s27 = scalar_lea.hbm %s3973_s9, 16 }
  0x4a   : > { %p3232_p2 = scmp.ne.s32.totalorder %s3973_s9, %s3231_s27  ;;  %p3238_p7 = scmp.lt.u32.totalorder %s3231_s27, %s3973_s9 }
  0x4c   : > { %p3234_p3 = pnand %p3232_p2, %p3505_p0 }
  0x4e   : > { %p3235_p4 = pneg %p3234_p3 }
  0x50   : > { %p3240_p8 = pnand %p3238_p7, %p3235_p4 }
  0x52   : > { %3243 = shalt.err (!%p3240_p8)
}
  0x53   : > { %s3244_s21 = scalar_lea.vmem %s461_s23, 16  ;;  %s3251_s29 = scalar_lea.vmem %s461_s23, 32 }
  0x54   : > { %p3245_p11 = scmp.ne.s32.totalorder %s461_s23, %s3244_s21  ;;  %p3252_p6 = scmp.lt.s32.totalorder %s461_s23, %s461_s23 }
  0x55   : > { %p3253_p9 = scmp.lt.s32.totalorder %s3251_s29, %s3244_s21 }
  0x56   : > { %p3247_p13 = pnand %p3245_p11, %p3505_p0 }
  0x57   : > { %p3254_p5 = por %p3253_p9, %p3252_p6 }
  0x58   : > { %p3248_p1 = pneg %p3247_p13 }
  0x5a   : > { %p3255_p10 = pnand %p3254_p5, %p3248_p1 }
  0x5c   : > { %3258 = shalt.err (!%p3255_p10)
}
  0x5d   : > { %3062 = dma.hbm_to_vmem [thread:$0]  (!%p3489_p12), %s3973_s9, 16, %s461_s23, [#allocation6]  }
  0x5e   : > { %p4011_p2 = scmp.ne.s32.totalorder %s4008_s18, 0 }
  0x5f   : > { %p4012_p3 = scmp.eq.s32.totalorder (!%p4011_p2), %s3451_s25, 0 }
  0x60   : > { %505 = sbr.rel (%p4011_p2) target bundleno = 4285 (0x10bd), region = 84 }
  0x67   : > { %3304 = dma.done.wait (%p4012_p3), [#allocation3], 16   ;;  %p4013_p0 = pmov %p4012_p3 }
  0x69   : > { %3306 = vsyncadd (%p4013_p0), [#allocation3], 4294967280  ;;  %p4014_p4 = pmov %p4013_p0 }
  0x6a   : > { %p4015_p5 = pmov %p4013_p0 }
  0x6b   : > { %3308 = dma.done.wait (%p4014_p4), [#allocation6], 272  }
  0x6c   : > { %3310 = vsyncadd (%p4015_p5), [#allocation6], 4294967024  ;;  %p566_p10 = scmp.lt.s32.totalorder %s3451_s25, 1  ;;  %v3336_v0 = vmov 0.0   ;;  %vm3337_vm0 = vmmov 0   ;;  %s4016_s11 = sld [smem:[#allocation20_spill]] }
  0x6d   : > { %2867 = vmatprep.subr.bf16.mxu1 %v3336_v0  ;;  %2871 = vmatprep.mubr.msk.bf16.mxu1 %vm3337_vm0, %v3336_v0  ;;  %v3598_v1 = vld [vmem:[%s3966_s2] sm:$0xff]   ;;  %v3603_v2 = vld [vmem:[%s3966_s2 + $0x8] sm:$0xff]   ;;  %vm601_vm1 = vcmask 261120   ;;  %vm771_vm2 = vcmask 64512   ;;  %s3338_s24 = smov 120   ;;  %s3339_s27 = smov 112  }
  0x6e   : > { %s3584_s16 = scalar_select %p566_p10, %s3451_s25, 1  ;;  %2896 = vmatprep.subr.mxu0 %v3336_v0  ;;  %2898 = vmatprep.mubr.msk.f32.mxu0 %vm3337_vm0, %v3336_v0  ;;  %v3614_v5 = vld [vmem:[%s3968_s4] sm:$0xff]   ;;  %v3621_v6 = vld [vmem:[%s3968_s4 + $0x8] sm:$0xff]   ;;  %vm1445_vm3 = vcmask 130048   ;;  %vm1447_vm4 = vcmask 195584  }
  0x6f   : > { %2868 = vmatpush3.bf16.msra.mxu1 %v3598_v1  ;;  %v3632_v7 = vld [vmem:[%s3970_s6] sm:$0xff]   ;;  %v3643_v8 = vld [vmem:[%s3970_s6 + $0x8] sm:$0xff]   ;;  %s3340_s17 = smov 104   ;;  %s3341_s19 = smov 8  }
  0x70   : > { %s2734_s23 = sshll.u32 %s3584_s16, 3  ;;  %2869 = vmatprep.subr.bf16.mxu1 %v3336_v0  ;;  %v3653_v13 = vld [vmem:[%s3969_s5] ss:$0 sm:$0xff]  ;;  %s3342_s28 = smov 16  }
  0x71   : > { %v3658_v15 = vld [vmem:[%s3967_s3] ss:$0 sm:$0xff]  ;;  %s573_s29 = scalar_lea.vmem %s3965_s1, %s2734_s23  ;;  %s3343_s16 = smov 24  }
  0x72   : > { %s569_s22 = scalar_lea.vmem %s4016_s11, %s2734_s23  ;;  %v3672_v21 = vld [vmem:[#allocation2] ss:$0 sm:$0xff]  ;;  %s4019_s30 = sld [smem:[#allocation13_spill]] }
  0x73   : > { %v3606_v3 = vld [vmem:[%s569_s22] sm:$0xff]  ;;  %2870 = vmatpush3.bf16.msra.mxu1 %v3603_v2  ;;  %s4020_s21 = sld [smem:[#allocation18_spill]]  ;;  %s2796_s23 = sshll.u32 %s3451_s25, 7 }
  0x74   : > { %v577_v4 = vpack.c.bf16 %v3606_v3, %v3606_v3  ;;  %2875 = vmatprep.subr.bf16.mxu1 %v3336_v0  ;;  %s4021_s11 = sld [smem:[#allocation23_spill]] }
  0x76   : > { %2872 = vmatmul.mubr.msk.bf16.vlgmr.msra.gmra.mrb[0].mxu1 %vm601_vm1, %v577_v4 }
  0x77   : > { %2876 = vmatpush3.bf16.msra.mxu1 %v3614_v5  ;;  %2879 = vmatprep.mubr.msk.bf16.mxu1 %vm3337_vm0, %v3336_v0 }
  0x78   : > { %2877 = vmatprep.subr.bf16.mxu1 %v3336_v0 }
  0x79   : > { %p4022_p7 = scmp.ne.s32.totalorder %s4020_s21, 0 }
  0x7a   : > { %s3921_s22 = scalar_lea.hbm %s4021_s11, %s2796_s23 }
  0x7b   : > { %2878 = vmatpush3.bf16.msra.mxu1 %v3621_v6 }
  0x7c   : > { %2883 = vmatprep.subr.bf16.mxu1 %v3336_v0 }
  0x7e   : > { %2880 = vmatmul.mubr.msk.bf16.vlgmr.msra.gmra.mrb[4].mxu1 %vm601_vm1, %v577_v4 }
  0x7f   : > { %2884 = vmatpush3.bf16.msra.mxu1 %v3632_v7  ;;  %2887 = vmatprep.mubr.msk.bf16.mxu1 %vm3337_vm0, %v3336_v0 }
  0x80   : > { %2885 = vmatprep.subr.bf16.mxu1 %v3336_v0 }
  0x83   : > { %2886 = vmatpush3.bf16.msra.mxu1 %v3643_v8 }
  0x84   : > { %2891 = vmatprep.subr.mxu1 %v3336_v0 }
  0x86   : > { %2888 = vmatmul.mubr.msk.bf16.vlgmr.msra.gmra.mrb[8].mxu1 %vm601_vm1, %v577_v4 }
  0x87   : > { %2893 = vmatprep.mubr.msk.f32.mxu1 %vm3337_vm0, %v3336_v0 }
 0x149   : > { %v639_v9 = vpop.f32.mrb[0].mxu1 }
 0x14a   : > { %v2873_v10 = vpop.f32.mrb[1].mxu1  ;;  %v640_v20 = vadd.f32 %v3658_v15, %v639_v9 }
 0x14b   : > { %v642_v11 = vpop.f32.mrb[2].mxu1 }
 0x14c   : > { %v2874_v12 = vpop.f32.mrb[3].mxu1 }
 0x151   : > { %v702_v14 = vpop.f32.mrb[4].mxu1 }
 0x152   : > { %v703_v16 = vadd.f32 %v3653_v13, %v702_v14  ;;  %v2881_v17 = vpop.f32.mrb[5].mxu1 }
 0x153   : > { %v705_v18 = vpop.f32.mrb[6].mxu1 }
 0x154   : > { %935 = vrot.lane.b32.xlu1 %v703_v16, %s3338_s24  ;;  %v2882_v19 = vpop.f32.mrb[7].mxu1  ;;  %2892 = vmatpush3.xpose.msk.msra.mxu1 %vm771_vm2, %v703_v16 }
 0x155   : > { %2906 = vmatprep.subr.mxu1 %v3336_v0 }
 0x157   : > { %2894 = vmatmul.mubr.msk.f32.vlgmr.msra.gmra.mrb[12].mxu1 %vm771_vm2, %v640_v20 }
 0x158   : > { %933 = vrot.lane.b32.xlu1 %v640_v20, %s3338_s24  ;;  %2908 = vmatprep.mubr.msk.f32.mxu1 %vm3337_vm0, %v3336_v0 }
 0x159   : > { %v765_v22 = vpop.f32.mrb[8].mxu1 }
 0x15a   : > { %v3675_v23 = vadd.f32 %v3672_v21, %v765_v22  ;;  %v2889_v24 = vpop.f32.mrb[9].mxu1 }
 0x15b   : > { %v768_v25 = vpop.f32.mrb[10].mxu1 }
 0x15c   : > { %1100 = vrot.lane.b32.xlu1 %v640_v20, %s3339_s27  ;;  %v2890_v26 = vpop.f32.mrb[11].mxu1  ;;  %2897 = vmatpush3.msra.mxu0 %v3675_v23 }
 0x15d   : > { %2901 = vmatprep.subr.mxu0 %v3336_v0 }
 0x160   : > { %1268 = vrot.lane.b32.xlu1 %v703_v16, %s3340_s17 }
 0x164   : > { %1266 = vrot.lane.b32.xlu1 %v640_v20, %s3340_s17 }
 0x1c6   : > { %v936_v37 = vpop.permute.xlu1 %935 }
 0x1ca   : > { %v934_v38 = vpop.permute.xlu1 %933 }
 0x1ce   : > { %v1101_v41 = vpop.permute.xlu1 %1100 }
 0x1d2   : > { %v1269_v43 = vpop.permute.xlu1 %1268 }
 0x1d6   : > { %v1267_v44 = vpop.permute.xlu1 %1266 }
 0x22a   : > { %v844_v27 = vpop.f32.mrb[12].mxu1 }
 0x22b   : > { %v848_v28 = vmul.f32 0.35355338, %v844_v27  ;;  %v2895_v29 = vpop.f32.mrb[13].mxu1 }
 0x22d   : > { %v849_v30 = vsel %vm771_vm2, %v848_v28, -inf }
 0x22e   : > { %850 = vmax.xlane.f32.xlu0 %v849_v30 }
 0x2bb   : > { %v851_v31 = vpop.xlane.xlu0 %850 }
 0x2bc   : > { %v852_v32 = vsub.f32 %v848_v28, %v851_v31 }
 0x2be   : > { %v853_v33 = vmul.f32 1.442695, %v852_v32 }
 0x2c0   : > { %3137 = vpow2.f32 %v853_v33  ;;  %v3730_v33 = vld [vmem:[#allocation5] sm:$0xff]  }
 0x2ca   : > { %v3138_v34 = vpop.eup %3137 }
 0x2cb   : > { %v855_v35 = vsel %vm771_vm2, %v3138_v34, 0.0 }
 0x2cc   : > { %856 = vadd.xlane.f32.xlu0 %v855_v35 }
 0x2e2   : > { %1102 = vrot.lane.b32.xlu0 %v703_v16, %s3339_s27 }
 0x359   : > { %v857_v36 = vpop.xlane.xlu0 %856 }
 0x35a   : > { %3139 = vrcp.f32 %v857_v36 }
 0x35d   : > { %v1103_v42 = vpop.permute.xlu0 %1102 }
 0x364   : > { %v3140_v39 = vpop.eup %3139 }
 0x365   : > { %v859_v40 = vmul.f32 %v3140_v39, %v3138_v34 }
 0x367   : > { %2899 = vmatmul.mubr.msk.f32.vlgmr.msra.gmra.mrb[0].mxu0 %vm771_vm2, %v859_v40 }
 0x368   : > { %2902 = vmatpush3.xpose.msk.msra.mxu0 %vm771_vm2, %v936_v37  ;;  %2903 = vmatprep.mubr.msk.f32.mxu0 %vm3337_vm0, %v3336_v0 }
 0x369   : > { %2911 = vmatprep.subr.mxu0 %v3336_v0 }
 0x36b   : > { %2904 = vmatmul.mubr.msk.f32.vlgmr.msra.gmra.mrb[2].mxu0 %vm771_vm2, %v934_v38  ;;  %v3741_v38 = vld [vmem:[#allocation5 + $0x8] sm:$0xff]  }
 0x36c   : > { %2912 = vmatpush3.xpose.msk.msra.mxu0 %vm771_vm2, %v1103_v42  ;;  %2913 = vmatprep.mubr.msk.f32.mxu0 %vm3337_vm0, %v3336_v0 }
 0x36d   : > { %2921 = vmatprep.subr.mxu0 %v3336_v0 }
 0x36f   : > { %2914 = vmatmul.mubr.msk.f32.vlgmr.msra.gmra.mrb[4].mxu0 %vm771_vm2, %v1101_v41 }
 0x370   : > { %2922 = vmatpush3.xpose.msk.msra.mxu0 %vm771_vm2, %v1269_v43  ;;  %2923 = vmatprep.mubr.msk.f32.mxu0 %vm3337_vm0, %v3336_v0 }
 0x371   : > { %2931 = vmatprep.subr.bf16.mxu0 %v3336_v0 }
 0x373   : > { %2924 = vmatmul.mubr.msk.f32.vlgmr.msra.gmra.mrb[6].mxu0 %vm771_vm2, %v1267_v44 }
 0x374   : > { %2935 = vmatprep.mubr.msk.bf16.mxu0 %vm3337_vm0, %v3336_v0  ;;  %2932 = vmatpush3.bf16.msra.mxu0 %v3730_v33 }
 0x375   : > { %2933 = vmatprep.subr.bf16.mxu0 %v3336_v0 }
 0x378   : > { %2934 = vmatpush3.bf16.msra.mxu0 %v3741_v38 }
 0x379   : > { %2947 = vmatprep.subr.bf16.mxu0 %v3336_v0 }
 0x43a   : > { %v3700_v45 = vpop.f32.mrb[0].mxu0 }
 0x43b   : > { %v2900_v46 = vpop.f32.mrb[1].mxu0 }
 0x43e   : > { %v1007_v47 = vpop.f32.mrb[2].mxu0 }
 0x43f   : > { %v1011_v48 = vmul.f32 0.35355338, %v1007_v47  ;;  %v2905_v49 = vpop.f32.mrb[3].mxu0 }
 0x441   : > { %v1012_v50 = vsel %vm771_vm2, %v1011_v48, -inf }
 0x442   : > { %1013 = vmax.xlane.f32.xlu1 %v1012_v50  ;;  %v1174_v51 = vpop.f32.mrb[4].mxu0  ;;  %v3770_v50 = vld [vmem:[#allocation7] ss:$0 sm:$0xff] }
 0x443   : > { %v1178_v52 = vmul.f32 0.35355338, %v1174_v51  ;;  %v2915_v53 = vpop.f32.mrb[5].mxu0 }
 0x445   : > { %v1179_v54 = vsel %vm771_vm2, %v1178_v52, -inf }
 0x446   : > { %1180 = vmax.xlane.f32.xlu0 %v1179_v54  ;;  %v1340_v55 = vpop.f32.mrb[6].mxu0 }
 0x447   : > { %v1344_v56 = vmul.f32 0.35355338, %v1340_v55  ;;  %v2925_v57 = vpop.f32.mrb[7].mxu0 }
 0x449   : > { %v1345_v58 = vsel %vm771_vm2, %v1344_v56, -inf }
 0x44a   : > { %1346 = vmax.xlane.f32.xlu1 %v1345_v58 }
 0x4cf   : > { %v1014_v59 = vpop.xlane.xlu1 %1013 }
 0x4d0   : > { %v1015_v60 = vsub.f32 %v1011_v48, %v1014_v59 }
 0x4d2   : > { %v1016_v61 = vmul.f32 1.442695, %v1015_v60 }
 0x4d3   : > { %v1181_v62 = vpop.xlane.xlu0 %1180 }
 0x4d4   : > { %3141 = vpow2.f32 %v1016_v61  ;;  %v1182_v63 = vsub.f32 %v1178_v52, %v1181_v62 }
 0x4d6   : > { %v1183_v4 = vmul.f32 1.442695, %v1182_v63 }
 0x4d7   : > { %v1347_v14 = vpop.xlane.xlu1 %1346 }
 0x4d8   : > { %3143 = vpow2.f32 %v1183_v4  ;;  %v1348_v16 = vsub.f32 %v1344_v56, %v1347_v14 }
 0x4da   : > { %v1349_v17 = vmul.f32 1.442695, %v1348_v16 }
 0x4dc   : > { %3145 = vpow2.f32 %v1349_v17 }
 0x4de   : > { %v3142_v9 = vpop.eup %3141 }
 0x4df   : > { %v1018_v10 = vsel %vm771_vm2, %v3142_v9, 0.0 }
 0x4e0   : > { %1019 = vadd.xlane.f32.xlu1 %v1018_v10 }
 0x4e2   : > { %v3144_v11 = vpop.eup %3143 }
 0x4e3   : > { %v1185_v12 = vsel %vm771_vm2, %v3144_v11, 0.0 }
 0x4e4   : > { %1186 = vadd.xlane.f32.xlu0 %v1185_v12 }
 0x4e6   : > { %v3146_v18 = vpop.eup %3145 }
 0x4e7   : > { %v1351_v19 = vsel %vm771_vm2, %v3146_v18, 0.0 }
 0x4f1   : > { %1190 = vrot.lane.b32.xlu1 %v3675_v23, %s3339_s27 }
 0x4fa   : > { %1024 = vrot.lane.b32.xlu0 %v3675_v23, %s3338_s24 }
 0x515   : > { %1352 = vadd.xlane.f32.xlu1 %v1351_v19 }
 0x526   : > { %1356 = vrot.lane.b32.xlu1 %v3675_v23, %s3340_s17 }
 0x56d   : > { %v1020_v20 = vpop.xlane.xlu1 %1019 }
 0x56e   : > { %3147 = vrcp.f32 %v1020_v20 }
 0x571   : > { %v1187_v22 = vpop.xlane.xlu0 %1186  ;;  %v1191_v27 = vpop.permute.xlu1 %1190 }
 0x572   : > { %3149 = vrcp.f32 %v1187_v22 }
 0x575   : > { %v1025_v24 = vpop.permute.xlu0 %1024 }
 0x576   : > { %2907 = vmatpush3.msra.mxu1 %v1025_v24 }
 0x577   : > { %2916 = vmatprep.subr.mxu1 %v3336_v0 }
 0x578   : > { %v3148_v25 = vpop.eup %3147 }
 0x579   : > { %v1022_v26 = vmul.f32 %v3148_v25, %v3142_v9 }
 0x57b   : > { %2909 = vmatmul.mubr.msk.f32.vlgmr.msra.gmra.mrb[14].mxu1 %vm771_vm2, %v1022_v26  ;;  %v3809_v26 = vld [vmem:[%s3978_s14] ss:$0 sm:$0xff] }
 0x57c   : > { %v3150_v28 = vpop.eup %3149  ;;  %2917 = vmatpush3.msra.mxu1 %v1191_v27  ;;  %2918 = vmatprep.mubr.msk.f32.mxu1 %vm3337_vm0, %v3336_v0 }
 0x57d   : > { %v1189_v29 = vmul.f32 %v3150_v28, %v3144_v11  ;;  %2926 = vmatprep.subr.mxu1 %v3336_v0  ;;  %v3814_v28 = vld [vmem:[%s3979_s15] ss:$0 sm:$0xff] }
 0x57f   : > { %2919 = vmatmul.mubr.msk.f32.vlgmr.msra.gmra.mrb[16].mxu1 %vm771_vm2, %v1189_v29 }
 0x580   : > { %2928 = vmatprep.mubr.msk.f32.mxu1 %vm3337_vm0, %v3336_v0 }
 0x5a2   : > { %v1353_v23 = vpop.xlane.xlu1 %1352 }
 0x5a3   : > { %3151 = vrcp.f32 %v1353_v23 }
 0x5a6   : > { %v1357_v30 = vpop.permute.xlu1 %1356 }
 0x5a7   : > { %2927 = vmatpush3.msra.mxu1 %v1357_v30 }
 0x5a8   : > { %2939 = vmatprep.subr.bf16.mxu1 %v3336_v0 }
 0x5ad   : > { %v3152_v31 = vpop.eup %3151 }
 0x5ae   : > { %v1355_v32 = vmul.f32 %v3152_v31, %v3146_v18 }
 0x5b0   : > { %2929 = vmatmul.mubr.msk.f32.vlgmr.msra.gmra.mrb[18].mxu1 %vm771_vm2, %v1355_v32 }
 0x5b1   : > { %2940 = vmatpush3.bf16.msra.mxu1 %v3598_v1  ;;  %2943 = vmatprep.mubr.msk.bf16.mxu1 %vm3337_vm0, %v3336_v0 }
 0x5b2   : > { %2941 = vmatprep.subr.bf16.mxu1 %v3336_v0 }
 0x5b5   : > { %2942 = vmatpush3.bf16.msra.mxu1 %v3603_v2  ;;  %v576_v2 = vld [vmem:[%s573_s29] sm:$0xff]  ;;  %s563_s29 = sand.u32 1, %s4019_s30  }
 0x5b6   : > { %2955 = vmatprep.subr.bf16.mxu1 %v3336_v0  ;;  %v1547_v37 = vpack.c.bf16 %v576_v2, %v576_v2  ;;  %s2608_s0 = scalar_lea.sflag [#allocation4], %s563_s29 }
 0x5b8   : > { %2944 = vmatmul.mubr.msk.bf16.vlgmr.msra.gmra.mrb[20].mxu1 %vm601_vm1, %v1547_v37 }
 0x5b9   : > { %2956 = vmatpush3.bf16.msra.mxu1 %v3632_v7  ;;  %2959 = vmatprep.mubr.msk.bf16.mxu1 %vm3337_vm0, %v3336_v0 }
 0x5ba   : > { %2957 = vmatprep.subr.bf16.mxu1 %v3336_v0 }
 0x5bd   : > { %2958 = vmatpush3.bf16.msra.mxu1 %v3643_v8 }
 0x5be   : > { %2968 = vmatprep.subr.mxu1 %v3336_v0 }
 0x64e   : > { %v1096_v34 = vpop.f32.mrb[14].mxu1 }
 0x64f   : > { %1433 = vrot.lane.b32.xlu0 %v1096_v34, %s3341_s19  ;;  %v2910_v1 = vpop.f32.mrb[15].mxu1 }
 0x652   : > { %v1262_v35 = vpop.f32.mrb[16].mxu1 }
 0x653   : > { %1437 = vrot.lane.b32.xlu1 %v1262_v35, %s3342_s28  ;;  %v2920_v36 = vpop.f32.mrb[17].mxu1 }
 0x683   : > { %v1428_v39 = vpop.f32.mrb[18].mxu1 }
 0x684   : > { %1441 = vrot.lane.b32.xlu0 %v1428_v39, %s3343_s16  ;;  %v2930_v40 = vpop.f32.mrb[19].mxu1 }
 0x6c1   : > { %v1434_v41 = vpop.permute.xlu0 %1433 }
 0x6c2   : > { %v1444_v7 = vsel %vm771_vm2, %v3700_v45, %v1434_v41  ;;  %v1585_v45 = vpop.f32.mrb[20].mxu1 }
 0x6c3   : > { %v1586_v47 = vadd.f32 %v3658_v15, %v1585_v45  ;;  %v2945_v48 = vpop.f32.mrb[21].mxu1 }
 0x6c4   : > { %v1588_v49 = vpop.f32.mrb[22].mxu1 }
 0x6c5   : > { %v1438_v42 = vpop.permute.xlu1 %1437  ;;  %1836 = vrot.lane.b32.xlu1 %v1586_v47, %s3338_s24 }
 0x6c6   : > { %v1446_v43 = vsel %vm1445_vm3, %v1444_v7, %v1438_v42 }
 0x6c9   : > { %2003 = vrot.lane.b32.xlu1 %v1586_v47, %s3339_s27 }
 0x6f6   : > { %v1442_v44 = vpop.permute.xlu0 %1441 }
 0x6f7   : > { %v1448_v46 = vsel %vm1447_vm4, %v1446_v43, %v1442_v44 }
 0x6f8   : > { %v1449_v8 = vpack.c.bf16 %v1448_v46, %v1448_v46 }
 0x6fa   : > { %2936 = vmatmul.mubr.msk.bf16.vlgmr.msra.gmra.mrb[8].mxu0 %vm601_vm1, %v1449_v8 }
 0x6fb   : > { %2948 = vmatpush3.bf16.msra.mxu0 %v3614_v5  ;;  %2951 = vmatprep.mubr.msk.bf16.mxu0 %vm3337_vm0, %v3336_v0  ;;  %v2946_v5 = vpop.f32.mrb[23].mxu1 }
 0x6fc   : > { %2949 = vmatprep.subr.bf16.mxu0 %v3336_v0 }
 0x6ff   : > { %2950 = vmatpush3.bf16.msra.mxu0 %v3621_v6 }
 0x700   : > { %2963 = vmatprep.subr.mxu0 %v3336_v0 }
 0x702   : > { %2952 = vmatmul.mubr.msk.bf16.vlgmr.msra.gmra.mrb[12].mxu0 %vm601_vm1, %v1547_v37 }
 0x703   : > { %2965 = vmatprep.mubr.msk.f32.mxu0 %vm3337_vm0, %v3336_v0 }
 0x7cd   : > { %v1510_v6 = vpop.f32.mrb[8].mxu0 }
 0x7ce   : > { %v1511_v51 = vadd.f32 %v3770_v50, %v1510_v6  ;;  %v2937_v52 = vpop.f32.mrb[9].mxu0 }
 0x7cf   : > { %v1513_v53 = vpop.f32.mrb[10].mxu0 }
 0x7d0   : > { %v2938_v54 = vpop.f32.mrb[11].mxu0  ;;  %v1516_v55 = vadd.f32 %v1511_v51, %v3606_v3  ;;  %v1837_v3 = vpop.permute.xlu1 %1836 }
 0x7d2   : > { %v1517_v56 = vsel %vm601_vm1, %v1516_v55, 0.0 }
 0x7d3   : > { %1518 = vadd.xlane.f32.xlu0 %v1517_v56 }
 0x7d5   : > { %v1625_v15 = vpop.f32.mrb[12].mxu0 }
 0x7d6   : > { %v1626_v57 = vadd.f32 %v3653_v13, %v1625_v15  ;;  %v2953_v58 = vpop.f32.mrb[13].mxu0  ;;  %v2004_v13 = vpop.permute.xlu1 %2003 }
 0x7d7   : > { %v1628_v59 = vpop.f32.mrb[14].mxu0 }
 0x7d8   : > { %2964 = vmatpush3.xpose.msk.msra.mxu0 %vm771_vm2, %v1626_v57  ;;  %1838 = vrot.lane.b32.xlu1 %v1626_v57, %s3338_s24  ;;  %v2954_v60 = vpop.f32.mrb[15].mxu0 }
 0x7d9   : > { %2973 = vmatprep.subr.mxu0 %v3336_v0 }
 0x7db   : > { %2966 = vmatmul.mubr.msk.f32.vlgmr.msra.gmra.mrb[16].mxu0 %vm771_vm2, %v1586_v47 }
 0x7dc   : > { %2005 = vrot.lane.b32.xlu1 %v1626_v57, %s3339_s27  ;;  %2975 = vmatprep.mubr.msk.f32.mxu0 %vm3337_vm0, %v3336_v0 }
 0x7e0   : > { %2171 = vrot.lane.b32.xlu1 %v1626_v57, %s3340_s17 }
 0x7e4   : > { %2169 = vrot.lane.b32.xlu1 %v1586_v47, %s3340_s17 }
 0x84a   : > { %v1839_v61 = vpop.permute.xlu1 %1838 }
 0x84b   : > { %2974 = vmatpush3.xpose.msk.msra.mxu0 %vm771_vm2, %v1839_v61 }
 0x84c   : > { %2983 = vmatprep.subr.mxu0 %v3336_v0 }
 0x84e   : > { %v2006_v62 = vpop.permute.xlu1 %2005  ;;  %2976 = vmatmul.mubr.msk.f32.vlgmr.msra.gmra.mrb[18].mxu0 %vm771_vm2, %v1837_v3 }
 0x84f   : > { %2984 = vmatpush3.xpose.msk.msra.mxu0 %vm771_vm2, %v2006_v62  ;;  %2985 = vmatprep.mubr.msk.f32.mxu0 %vm3337_vm0, %v3336_v0 }
 0x850   : > { %2993 = vmatprep.subr.mxu0 %v3336_v0 }
 0x852   : > { %v2172_v63 = vpop.permute.xlu1 %2171  ;;  %2986 = vmatmul.mubr.msk.f32.vlgmr.msra.gmra.mrb[20].mxu0 %vm771_vm2, %v2004_v13 }
 0x853   : > { %2994 = vmatpush3.xpose.msk.msra.mxu0 %vm771_vm2, %v2172_v63  ;;  %2995 = vmatprep.mubr.msk.f32.mxu0 %vm3337_vm0, %v3336_v0 }
 0x854   : > { %3003 = vmatprep.subr.bf16.mxu0 %v3336_v0 }
 0x856   : > { %v2170_v4 = vpop.permute.xlu1 %2169 }
 0x857   : > { %2996 = vmatmul.mubr.msk.f32.vlgmr.msra.gmra.mrb[22].mxu0 %vm771_vm2, %v2170_v4 }
 0x858   : > { %3004 = vmatpush3.bf16.msra.mxu0 %v3730_v33  ;;  %3007 = vmatprep.mubr.msk.bf16.mxu0 %vm3337_vm0, %v3336_v0 }
 0x859   : > { %3005 = vmatprep.subr.bf16.mxu0 %v3336_v0 }
 0x85c   : > { %3006 = vmatpush3.bf16.msra.mxu0 %v3741_v38 }
 0x85d   : > { %3019 = vmatprep.subr.bf16.mxu0 %v3336_v0 }
 0x860   : > { %v1519_v9 = vpop.xlane.xlu0 %1518 }
 0x861   : > { %v1521_v10 = vmul.f32 0.03125, %v1519_v9 }
 0x863   : > { %v1522_v11 = vsub.f32 %v1516_v55, %v1521_v10 }
 0x865   : > { %v1523_v12 = vmul.f32 %v1522_v11, %v1522_v11 }
 0x867   : > { %v1524_v14 = vsel %vm601_vm1, %v1523_v12, 0.0 }
 0x868   : > { %1525 = vadd.xlane.f32.xlu1 %v1524_v14 }
 0x8ae   : > { %v1747_v16 = vpop.f32.mrb[16].mxu0 }
 0x8af   : > { %v1751_v17 = vmul.f32 0.35355338, %v1747_v16  ;;  %v2967_v18 = vpop.f32.mrb[17].mxu0 }
 0x8b1   : > { %v1752_v19 = vsel %vm771_vm2, %v1751_v17, -inf }
 0x8b2   : > { %1753 = vmax.xlane.f32.xlu0 %v1752_v19 }
 0x8f5   : > { %v1526_v20 = vpop.xlane.xlu1 %1525 }
 0x8f6   : > { %v1527_v22 = vmul.f32 0.03125, %v1526_v20 }
 0x8f8   : > { %v1528_v24 = vadd.f32 1e-05, %v1527_v22 }
 0x8fa   : > { %3153 = vrsqrt.f32 %v1528_v24 }
 0x904   : > { %v3154_v25 = vpop.eup %3153 }
 0x905   : > { %v1530_v27 = vmul.f32 %v3154_v25, %v1522_v11 }
 0x907   : > { %v1538_v29 = vmul.f32 %v3809_v26, %v1530_v27 }
 0x909   : > { %v3818_v23 = vadd.f32 %v3814_v28, %v1538_v29 }
 0x90b   : > { %v1631_v30 = vpack.c.bf16 %v3818_v23, %v3818_v23 }
 0x90d   : > { %2960 = vmatmul.mubr.msk.bf16.vlgmr.msra.gmra.mrb[24].mxu1 %vm601_vm1, %v1631_v30 }
 0x90e   : > { %2970 = vmatprep.mubr.msk.f32.mxu1 %vm3337_vm0, %v3336_v0 }
 0x921   : > { %v1910_v31 = vpop.f32.mrb[18].mxu0 }
 0x922   : > { %v1914_v32 = vmul.f32 0.35355338, %v1910_v31  ;;  %v2977_v33 = vpop.f32.mrb[19].mxu0 }
 0x924   : > { %v1915_v34 = vsel %vm771_vm2, %v1914_v32, -inf }
 0x925   : > { %1916 = vmax.xlane.f32.xlu0 %v1915_v34  ;;  %v2077_v1 = vpop.f32.mrb[20].mxu0 }
 0x926   : > { %v2081_v35 = vmul.f32 0.35355338, %v2077_v1  ;;  %v2987_v36 = vpop.f32.mrb[21].mxu0 }
 0x928   : > { %v2082_v2 = vsel %vm771_vm2, %v2081_v35, -inf }
 0x929   : > { %2083 = vmax.xlane.f32.xlu0 %v2082_v2 }
 0x92a   : > { %v2243_v37 = vpop.f32.mrb[22].mxu0 }
 0x92b   : > { %v2247_v38 = vmul.f32 0.35355338, %v2243_v37  ;;  %v2997_v39 = vpop.f32.mrb[23].mxu0 }
 0x92d   : > { %v2248_v40 = vsel %vm771_vm2, %v2247_v38, -inf }
 0x92e   : > { %2249 = vmax.xlane.f32.xlu0 %v2248_v40 }
 0x93f   : > { %v1754_v41 = vpop.xlane.xlu0 %1753 }
 0x940   : > { %v1755_v42 = vsub.f32 %v1751_v17, %v1754_v41 }
 0x942   : > { %v1756_v7 = vmul.f32 1.442695, %v1755_v42 }
 0x944   : > { %3155 = vpow2.f32 %v1756_v7 }
 0x94e   : > { %v3156_v43 = vpop.eup %3155 }
 0x94f   : > { %v1758_v44 = vsel %vm771_vm2, %v3156_v43, 0.0 }
 0x950   : > { %1759 = vadd.xlane.f32.xlu0 %v1758_v44 }
 0x9b2   : > { %v1917_v46 = vpop.xlane.xlu0 %1916 }
 0x9b3   : > { %v1918_v8 = vsub.f32 %v1914_v32, %v1917_v46 }
 0x9b5   : > { %v1919_v45 = vmul.f32 1.442695, %v1918_v8 }
 0x9b6   : > { %v2084_v47 = vpop.xlane.xlu0 %2083 }
 0x9b7   : > { %3157 = vpow2.f32 %v1919_v45  ;;  %v2085_v48 = vsub.f32 %v2081_v35, %v2084_v47  ;;  %v3127_v47 = vld [vmem:[%s3974_s10] sm:$0xff]  }
 0x9b9   : > { %v2086_v49 = vmul.f32 1.442695, %v2085_v48  ;;  %v3130_v48 = vld [vmem:[%s3976_s12 + $0x8] sm:$0xff]  }
 0x9bb   : > { %3159 = vpow2.f32 %v2086_v49  ;;  %v2250_v5 = vpop.xlane.xlu0 %2249  ;;  %v3131_v49 = vld [vmem:[%s3976_s12 + $0x10] sm:$0xff]  }
 0x9bc   : > { %v2251_v6 = vsub.f32 %v2247_v38, %v2250_v5  ;;  %v3132_v5 = vld [vmem:[%s3976_s12 + $0x18] sm:$0xff]  }
 0x9be   : > { %v2252_v51 = vmul.f32 1.442695, %v2251_v6  ;;  %v3133_v6 = vld [vmem:[%s3976_s12 + $0x20] sm:$0xff]  }
 0x9c0   : > { %3161 = vpow2.f32 %v2252_v51  ;;  %v3134_v51 = vld [vmem:[%s3976_s12 + $0x28] sm:$0xff]  }
 0x9c1   : > { %v3158_v52 = vpop.eup %3157 }
 0x9c2   : > { %v1921_v53 = vsel %vm771_vm2, %v3158_v52, 0.0 }
 0x9c3   : > { %1922 = vadd.xlane.f32.xlu0 %v1921_v53 }
 0x9c5   : > { %v3160_v54 = vpop.eup %3159 }
 0x9c6   : > { %v2088_v55 = vsel %vm771_vm2, %v3160_v54, 0.0 }
 0x9c7   : > { %2089 = vadd.xlane.f32.xlu0 %v2088_v55 }
 0x9ca   : > { %v3162_v56 = vpop.eup %3161 }
 0x9cb   : > { %v2254_v15 = vsel %vm771_vm2, %v3162_v56, 0.0 }
 0x9cc   : > { %2255 = vadd.xlane.f32.xlu1 %v2254_v15 }
 0x9dd   : > { %v1760_v57 = vpop.xlane.xlu0 %1759 }
 0x9de   : > { %3163 = vrcp.f32 %v1760_v57 }
 0x9e0   : > { %v1669_v58 = vpop.f32.mrb[24].mxu1 }
 0x9e1   : > { %v1670_v59 = vadd.f32 %v3672_v21, %v1669_v58  ;;  %v2961_v60 = vpop.f32.mrb[25].mxu1 }
 0x9e2   : > { %v1672_v3 = vpop.f32.mrb[26].mxu1  ;;  %v3136_v60 = vld [vmem:[%s3976_s12 + $0x38] sm:$0xff]  }
 0x9e3   : > { %2093 = vrot.lane.b32.xlu1 %v1670_v59, %s3339_s27  ;;  %1927 = vrot.lane.b32.xlu0 %v1670_v59, %s3338_s24  ;;  %v2962_v13 = vpop.f32.mrb[27].mxu1  ;;  %s4017_s27 = sld [smem:[#allocation21_spill]]  ;;  %s3344_s24 = smov [#allocation8]  }
 0x9e4   : > { %2969 = vmatpush3.msra.mxu1 %v1670_v59 }
 0x9e5   : > { %2978 = vmatprep.subr.mxu1 %v3336_v0 }
 0x9e7   : > { %2259 = vrot.lane.b32.xlu1 %v1670_v59, %s3340_s17  ;;  %v3135_v59 = vld [vmem:[%s3976_s12 + $0x30] sm:$0xff]  }
 0x9e8   : > { %v3164_v61 = vpop.eup %3163 }
 0x9e9   : > { %v1762_v62 = vmul.f32 %v3164_v61, %v3156_v43  ;;  %v2782_v3 = vld [vmem:[%s4017_s27] ss:$0 sm:$0xff]  ;;  %s3263_s27 = sshll.u32 %s3344_s24, 4  ;;  %s3264_s27 = int_to_ptr.vmem [resolvable:$false] %s3263_s27 }
 0x9ea   : > { %s3265_s17 = scalar_lea.vmem %s3264_s27, 256 }
 0x9eb   : > { %2971 = vmatmul.mubr.msk.f32.vlgmr.msra.gmra.mrb[28].mxu1 %vm771_vm2, %v1762_v62 }
 0x9ec   : > { %2980 = vmatprep.mubr.msk.f32.mxu1 %vm3337_vm0, %v3336_v0 }
 0xa50   : > { %v1923_v21 = vpop.xlane.xlu0 %1922 }
 0xa51   : > { %3165 = vrcp.f32 %v1923_v21 }
 0xa54   : > { %v2090_v63 = vpop.xlane.xlu0 %2089 }
 0xa55   : > { %3167 = vrcp.f32 %v2090_v63 }
 0xa58   : > { %v1928_v4 = vpop.permute.xlu0 %1927 }
 0xa59   : > { %v2256_v9 = vpop.xlane.xlu1 %2255  ;;  %2979 = vmatpush3.msra.mxu1 %v1928_v4 }
 0xa5a   : > { %3169 = vrcp.f32 %v2256_v9  ;;  %2988 = vmatprep.subr.mxu1 %v3336_v0 }
 0xa5b   : > { %v3166_v10 = vpop.eup %3165 }
 0xa5c   : > { %v1925_v11 = vmul.f32 %v3166_v10, %v3158_v52 }
 0xa5d   : > { %v2094_v12 = vpop.permute.xlu1 %2093 }
 0xa5e   : > { %2981 = vmatmul.mubr.msk.f32.vlgmr.msra.gmra.mrb[30].mxu1 %vm771_vm2, %v1925_v11 }
 0xa5f   : > { %v3168_v14 = vpop.eup %3167  ;;  %2989 = vmatpush3.msra.mxu1 %v2094_v12  ;;  %2990 = vmatprep.mubr.msk.f32.mxu1 %vm3337_vm0, %v3336_v0 }
 0xa60   : > { %v2092_v16 = vmul.f32 %v3168_v14, %v3160_v54  ;;  %2998 = vmatprep.subr.mxu1 %v3336_v0 }
 0xa61   : > { %v2260_v17 = vpop.permute.xlu1 %2259 }
 0xa62   : > { %2991 = vmatmul.mubr.msk.f32.vlgmr.msra.gmra.mrb[32].mxu1 %vm771_vm2, %v2092_v16 }
 0xa63   : > { %2999 = vmatpush3.msra.mxu1 %v2260_v17  ;;  %3000 = vmatprep.mubr.msk.f32.mxu1 %vm3337_vm0, %v3336_v0 }
 0xa64   : > { %v3170_v18 = vpop.eup %3169  ;;  %3011 = vmatprep.subr.bf16.mxu1 %v3336_v0 }
 0xa65   : > { %v2258_v19 = vmul.f32 %v3170_v18, %v3162_v56 }
 0xa67   : > { %3001 = vmatmul.mubr.msk.f32.vlgmr.msra.gmra.mrb[34].mxu1 %vm771_vm2, %v2258_v19 }
 0xa68   : > { %3015 = vmatprep.mubr.msk.bf16.mxu1 %vm3337_vm0, %v3336_v0  ;;  %3012 = vmatpush3.bf16.msra.mxu1 %v3127_v47 }
 0xa69   : > { %3013 = vmatprep.subr.bf16.mxu1 %v3336_v0 }
 0xabe   : > { %v1832_v20 = vpop.f32.mrb[28].mxu1 }
 0xabf   : > { %v2972_v22 = vpop.f32.mrb[29].mxu1 }
 0xb31   : > { %v1999_v24 = vpop.f32.mrb[30].mxu1 }
 0xb32   : > { %2336 = vrot.lane.b32.xlu0 %v1999_v24, %s3341_s19  ;;  %v2982_v25 = vpop.f32.mrb[31].mxu1 }
 0xb35   : > { %v2165_v27 = vpop.f32.mrb[32].mxu1 }
 0xb36   : > { %2340 = vrot.lane.b32.xlu1 %v2165_v27, %s3342_s28  ;;  %v2992_v29 = vpop.f32.mrb[33].mxu1  ;;  %s4018_s28 = sld [smem:[#allocation22_spill]] }
 0xb3a   : > { %v2331_v30 = vpop.f32.mrb[34].mxu1 }
 0xb3b   : > { %2344 = vrot.lane.b32.xlu0 %v2331_v30, %s3343_s16  ;;  %v3002_v31 = vpop.f32.mrb[35].mxu1  ;;  %s2733_s16 = sshll.u32 %s563_s29, 3 }
 0xb3c   : > { %s565_s20 = scalar_lea.vmem [#allocation8], %s2733_s16 }
 0xb3d   : > { %s2621_s13 = sshll.u32 %s565_s20, 4  ;;  %s3923_s13 = int_to_ptr.vmem [resolvable:$true] %s2621_s13 }
 0xb3e   : > { %s3259_s25 = scalar_lea.vmem %s3923_s13, 128  ;;  %p3266_p13 = scmp.lt.s32.totalorder %s3923_s13, %s3264_s27 }
 0xb3f   : > { %p3260_p12 = scmp.ne.s32.totalorder %s3923_s13, %s3259_s25  ;;  %p3267_p1 = scmp.lt.s32.totalorder %s3265_s17, %s3259_s25 }
 0xb41   : > { %p3261_p8 = pnand %p3260_p12, %p4022_p7  ;;  %p3268_p6 = por %p3267_p1, %p3266_p13 }
 0xb43   : > { %p3262_p11 = pneg %p3261_p8 }
 0xb45   : > { %p3269_p9 = pnand %p3268_p6, %p3262_p11 }
 0xba4   : > { %v2337_v32 = vpop.permute.xlu0 %2336 }
 0xba5   : > { %v2347_v34 = vsel %vm771_vm2, %v1832_v20, %v2337_v32 }
 0xba8   : > { %v2341_v33 = vpop.permute.xlu1 %2340 }
 0xba9   : > { %v2348_v1 = vsel %vm1445_vm3, %v2347_v34, %v2341_v33 }
 0xbad   : > { %v2345_v35 = vpop.permute.xlu0 %2344 }
 0xbae   : > { %v2349_v36 = vsel %vm1447_vm4, %v2348_v1, %v2345_v35 }
 0xbaf   : > { %v2350_v2 = vpack.c.bf16 %v2349_v36, %v2349_v36 }
 0xbb1   : > { %3008 = vmatmul.mubr.msk.bf16.vlgmr.msra.gmra.mrb[24].mxu0 %vm601_vm1, %v2350_v2 }
 0xbb2   : > { %3035 = vmatprep.mubr.msk.bf16.mxu0 %vm3337_vm0, %v3336_v0 }
 0xc84   : > { %v2388_v37 = vpop.f32.mrb[24].mxu0 }
 0xc85   : > { %v2389_v38 = vadd.f32 %v3770_v50, %v2388_v37  ;;  %v3009_v39 = vpop.f32.mrb[25].mxu0  ;;  %v3128_v50 = vld [vmem:[%s3974_s10 + $0x8] sm:$0xff]  }
 0xc86   : > { %v2391_v40 = vpop.f32.mrb[26].mxu0  ;;  %3014 = vmatpush3.bf16.msra.mxu1 %v3128_v50 }
 0xc87   : > { %v3010_v41 = vpop.f32.mrb[27].mxu0  ;;  %v2394_v42 = vadd.f32 %v2389_v38, %v3818_v23  ;;  %v3129_v23 = vld [vmem:[%s3976_s12] sm:$0xff]  }
 0xc88   : > { %3020 = vmatpush3.bf16.msra.mxu0 %v3129_v23 }
 0xc89   : > { %v2395_v7 = vsel %vm601_vm1, %v2394_v42, 0.0  ;;  %3021 = vmatprep.subr.bf16.mxu0 %v3336_v0 }
 0xc8a   : > { %2396 = vadd.xlane.f32.xlu1 %v2395_v7 }
 0xc8c   : > { %3022 = vmatpush3.bf16.msra.mxu0 %v3130_v48 }
 0xc8d   : > { %3023 = vmatprep.subr.bf16.mxu0 %v3336_v0 }
 0xc90   : > { %3024 = vmatpush3.bf16.msra.mxu0 %v3131_v49 }
 0xc91   : > { %3025 = vmatprep.subr.bf16.mxu0 %v3336_v0 }
 0xc94   : > { %3026 = vmatpush3.bf16.msra.mxu0 %v3132_v5 }
 0xc95   : > { %3027 = vmatprep.subr.bf16.mxu0 %v3336_v0 }
 0xc98   : > { %3028 = vmatpush3.bf16.msra.mxu0 %v3133_v6 }
 0xc99   : > { %3029 = vmatprep.subr.bf16.mxu0 %v3336_v0 }
 0xc9c   : > { %3030 = vmatpush3.bf16.msra.mxu0 %v3134_v51 }
 0xc9d   : > { %3031 = vmatprep.subr.bf16.mxu0 %v3336_v0 }
 0xca0   : > { %3032 = vmatpush3.bf16.msra.mxu0 %v3135_v59 }
 0xca1   : > { %3033 = vmatprep.subr.bf16.mxu0 %v3336_v0  ;;  %v2786_v0 = vld [vmem:[%s4018_s28] ss:$0 sm:$0xff] }
 0xca4   : > { %3034 = vmatpush3.bf16.msra.mxu0 %v3136_v60 }
 0xd17   : > { %v2397_v43 = vpop.xlane.xlu1 %2396 }
 0xd18   : > { %v2398_v44 = vmul.f32 0.03125, %v2397_v43 }
 0xd1a   : > { %v2399_v46 = vsub.f32 %v2394_v42, %v2398_v44 }
 0xd1c   : > { %v2400_v8 = vmul.f32 %v2399_v46, %v2399_v46 }
 0xd1e   : > { %v2401_v45 = vsel %vm601_vm1, %v2400_v8, 0.0 }
 0xd1f   : > { %2402 = vadd.xlane.f32.xlu0 %v2401_v45 }
 0xdac   : > { %v2403_v52 = vpop.xlane.xlu0 %2402 }
 0xdad   : > { %v2404_v53 = vmul.f32 0.03125, %v2403_v52 }
 0xdaf   : > { %v2405_v54 = vadd.f32 1e-05, %v2404_v53 }
 0xdb1   : > { %3171 = vrsqrt.f32 %v2405_v54 }
 0xdbb   : > { %v3172_v55 = vpop.eup %3171 }
 0xdbc   : > { %v2407_v56 = vmul.f32 %v3172_v55, %v2399_v46 }
 0xdbe   : > { %v2408_v15 = vmul.f32 %v3809_v26, %v2407_v56 }
 0xdc0   : > { %v2409_v57 = vadd.f32 %v3814_v28, %v2408_v15 }
 0xdc2   : > { %v2410_v58 = vpack.c.bf16 %v2409_v57, %v2409_v57 }
 0xdc4   : > { %3016 = vmatmul.mubr.msk.bf16.vlgmr.msra.gmra.mrb[36].mxu1 %vm601_vm1, %v2410_v58 }
 0xe97   : > { %v2471_v13 = vpop.f32.mrb[36].mxu1 }
 0xe98   : > { %v2472_v61 = vadd.f32 %v2782_v3, %v2471_v13  ;;  %v3017_v62 = vpop.f32.mrb[37].mxu1 }
 0xe99   : > { %v2474_v21 = vpop.f32.mrb[38].mxu1 }
 0xe9a   : > { %v2477_v63 = vmax.f32 %v2472_v61, 0.0  ;;  %v3018_v4 = vpop.f32.mrb[39].mxu1 }
 0xe9c   : > { %v2478_v9 = vpack.c.bf16 %v2477_v63, %v2477_v63 }
 0xe9e   : > { %3036 = vmatmul.mubr.bf16.vlgmr.msra.gmra.mrb[28].mxu0 %v2478_v9 }
 0xf71   : > { %v2584_v10 = vpop.f32.mrb[28].mxu0 }
 0xf72   : > { %v2585_v11 = vadd.f32 %v2786_v0, %v2584_v10  ;;  %v3037_v12 = vpop.f32.mrb[29].mxu0 }
 0xf73   : > { %v2587_v14 = vpop.f32.mrb[30].mxu0 }
 0xf74   : > { %v3038_v16 = vpop.f32.mrb[31].mxu0  ;;  %v2590_v17 = vadd.f32 %v2585_v11, %v2409_v57 }
 0xf76   : > { %v2591_v18 = vsel %vm601_vm1, %v2590_v17, 0.0 }
 0xf77   : > { %2592 = vadd.xlane.f32.xlu0 %v2591_v18 }
0x1004   : > { %v2593_v19 = vpop.xlane.xlu0 %2592 }
0x1005   : > { %v2594_v20 = vmul.f32 0.03125, %v2593_v19 }
0x1007   : > { %v2595_v22 = vsub.f32 %v2590_v17, %v2594_v20 }
0x1009   : > { %v2596_v24 = vmul.f32 %v2595_v22, %v2595_v22 }
0x100b   : > { %v2597_v25 = vsel %vm601_vm1, %v2596_v24, 0.0 }
0x100c   : > { %2598 = vadd.xlane.f32.xlu1 %v2597_v25 }
0x1099   : > { %v2599_v27 = vpop.xlane.xlu1 %2598 }
0x109a   : > { %v2600_v29 = vmul.f32 0.03125, %v2599_v27 }
0x109c   : > { %v2601_v30 = vadd.f32 1e-05, %v2600_v29 }
0x109e   : > { %3173 = vrsqrt.f32 %v2601_v30 }
0x10a8   : > { %v3174_v31 = vpop.eup %3173 }
0x10a9   : > { %v2603_v32 = vmul.f32 %v3174_v31, %v2595_v22 }
0x10ab   : > { %v2604_v33 = vmul.f32 %v3809_v26, %v2603_v32 }
0x10ad   : > { %v2605_v34 = vadd.f32 %v3814_v28, %v2604_v33 }
0x10af   : > { %2606 = vst.msk [vmem:[%s565_s20] sm:$0xff] %vm601_vm1, %v2605_v34 }
0x10b0   : > { %3272 = shalt.err (!%p3269_p9)
}
0x10b1   : > { %s3273_s19 = scalar_lea.hbm %s3921_s22, 128  ;;  %s3277_s29 = scalar_lea.hbm %s4021_s11, 256 }
0x10b2   : > { %p3274_p2 = scmp.ne.s32.totalorder %s3921_s22, %s3273_s19  ;;  %p3278_p4 = scmp.lt.u32.totalorder %s3921_s22, %s4021_s11 }
0x10b3   : > { %p3279_p5 = scmp.lt.u32.totalorder %s3277_s29, %s3273_s19  ;;  %p3281_p12 = scmp.lt.u32.totalorder %s3273_s19, %s3921_s22 }
0x10b4   : > { %p3275_p3 = pnand %p3274_p2, %p4022_p7 }
0x10b5   : > { %p3280_p10 = por %p3279_p5, %p3278_p4 }
0x10b6   : > { %p3276_p0 = pneg %p3275_p3 }
0x10b7   : > { %p3282_p8 = por %p3281_p12, %p3280_p10 }
0x10b9   : > { %p3283_p11 = pnand %p3282_p8, %p3276_p0 }
0x10bb   : > { %3286 = shalt.err (!%p3283_p11)
}
0x10bc   : > { %3051 = dma.vmem_to_hbm [thread:$0]  (%p4022_p7), %s3923_s13, 128, %s3921_s22, %s2608_s0  }
0x10bd PF: > { %s4023_s20 = sld [smem:[#allocation15_spill]]  ;;  %s4024_s18 = sld [smem:[#allocation12_spill]] }
0x10be   : > { %s4025_s26 = sld [smem:[#allocation19_spill]] }
0x10c3   : > { %p3073_p13 = scmp.ge.s32.totalorder %s4023_s20, 2  ;;  %s2633_s25 = sand.u32 1, %s4024_s18  }
0x10c4   : > { %p4026_p1 = scmp.ne.s32.totalorder %s4025_s26, 0  ;;  %s2634_s24 = scalar_lea.sflag [#allocation4], %s2633_s25 }
0x10c6   : > { %p3064_p6 = pnand %p3073_p13, %p4026_p1 }
0x10c8   : > { %3312 = dma.done.wait (!%p3064_p6), %s2634_s24, 128  }
0x10c9   : > { %3314 = vsyncadd (!%p3064_p6), %s2634_s24, 4294967168  ;;  %s4027_s24 = sld [smem:[#allocation16_spill]]  ;;  %s4028_s21 = sld [smem:[#allocation13_spill]] }
0x10ca   : > { %s4029_s22 = sld [smem:[#allocation14_spill]]  ;;  %s4030_s23 = sld [smem:[#allocation17_spill]] }
0x10cf   : > { %p28_p9 = scmp.ge.s32.totalorder %s4027_s24, 4  }
0x10d1   :  { %30 = sbr.rel (!%p28_p9) target bundleno = 10 (0xa), region = 135 }
0x10d8   :  { %2639 = vsyncpa [#allocation3], 1 }
0x10d9   :  { %2641 = vsyncpa [#allocation3 + $0x1], 1 }
0x10da   :  { %2642 = vsyncpa [#allocation6], 1 }
0x10db   :  { %2643 = vsyncpa [#allocation4], 1 }
0x10dc   :  { %2645 = vsyncpa [#allocation4 + $0x1], 1 }

</bundles_post_ra>
